<compile_context>
chip_gen: v7x
topology: tpu7x:2x2x1
jax: 0.10.0
libtpu: 0.0.40
codegen_flags: <defaults>
</compile_context>

<pallas_src>
import functools

import jax
import jax.numpy as jnp
from jax import lax
from jax.experimental import pallas as pl
from jax.experimental.pallas import tpu as pltpu

LANES = 128  # TPU vreg lane width


# ------------------------------- in-kernel math ------------------------------

def _layernorm(x, g, b, eps):
    mean = jnp.mean(x, axis=-1, keepdims=True)
    xc = x - mean
    var = jnp.mean(xc * xc, axis=-1, keepdims=True)
    return xc * lax.rsqrt(var + eps) * g + b


def _gelu(x):
    # TODO(synk): HF BERT's default activation is the erf-based "gelu"; the tanh
    # approximation is used here (weights are synthetic, so there is no
    # checkpoint reference to match numerically).
    return 0.5 * x * (1.0 + jnp.tanh(0.7978845608028654 * (x + 0.044715 * x * x * x)))


# ----------------------- single fused BaseNet kernel -------------------------

def _basenet_kernel(tidx_ref,                         # scalar prefetch [B] (SMEM)
                    mask_ref, emb_ref,                # per-batch-row activations
                    embg_ref, embb_ref,               # embedding LayerNorm params
                    wqkv_ref, bqkv_ref, wo_ref, bo_ref,
                    ln1g_ref, ln1b_ref,
                    w1_ref, b1_ref, w2_ref, b2_ref,
                    ln2g_ref, ln2b_ref,
                    o_ref,                            # [1, 1, HP] lane-dense slab
                    h_scratch,                        # VMEM [S, H] f32
                    *, n_active, nh, scale, eps, normalize, norm_eps):
    S, H = emb_ref.shape[1], emb_ref.shape[2]
    hd = H // nh
    HP = o_ref.shape[2]
    bf16 = jnp.bfloat16

    mask = mask_ref[0]                                # [1, S] additive mask bias

    # Embedding LayerNorm fused into the same kernel (no standalone launch).
    x = _layernorm(emb_ref[0], embg_ref[...], embb_ref[...], eps)   # [S, H] f32

    # Encoder layers: weights stacked on a leading layer axis, looped in-kernel.
    # n_active is small & static here; at BERT-base depth use lax.fori_loop or a
    # grid axis marked "arbitrary" to bound vreg live ranges.
    for l in range(n_active):
        # Fused QKV projection: one [S,H]x[H,3H] bf16 MXU matmul, f32 accumulation.
        qkv = jnp.dot(x.astype(bf16), wqkv_ref[l],
                      preferred_element_type=jnp.float32) + bqkv_ref[l]
        qkv_b = qkv.astype(bf16)

        # TODO(synk): at BERT-base (nh=12, hd=64) replace the unrolled head loop
        # with a head-batched formulation / fori_loop so slices stay 128-aligned.
        ctx_heads = []
        for h in range(nh):                           # static & tiny -> unrolled
            lo = h * hd
            qh = qkv_b[:, lo:lo + hd]
            kh = qkv_b[:, H + lo:H + lo + hd]
            vh = qkv_b[:, 2 * H + lo:2 * H + lo + hd]
            # scores = q @ k^T via dot_general (contract last dims, no transpose)
            s = lax.dot_general(qh, kh, (((1,), (1,)), ((), ())),
                                preferred_element_type=jnp.float32) * scale
            s = s + mask                              # broadcast [1,S] over queries
            s = s - jnp.max(s, axis=-1, keepdims=True)
            p = jnp.exp(s)
            p = p / jnp.sum(p, axis=-1, keepdims=True)   # exact divide (correctness)
            ctx_heads.append(jnp.dot(p.astype(bf16), vh,
                                     preferred_element_type=jnp.float32))
        # One [S,H]x[H,H] output projection instead of nh tiny per-head matmuls.
        ctx = jnp.concatenate(ctx_heads, axis=-1)     # [S, H] f32
        attn = jnp.dot(ctx.astype(bf16), wo_ref[l],
                       preferred_element_type=jnp.float32) + bo_ref[l]

        h1 = _layernorm(attn + x, ln1g_ref[l], ln1b_ref[l], eps)

        ff = jnp.dot(h1.astype(bf16), w1_ref[l],
                     preferred_element_type=jnp.float32) + b1_ref[l]
        ff = _gelu(ff)
        ff = jnp.dot(ff.astype(bf16), w2_ref[l],
                     preferred_element_type=jnp.float32) + b2_ref[l]
        x = _layernorm(ff + h1, ln2g_ref[l], ln2b_ref[l], eps)

    # Target-token gather + optional L2 normalize, fused into the same kernel.
    h_scratch[...] = x
    b = pl.program_id(0)
    t = jnp.minimum(jnp.maximum(tidx_ref[b], 0), S - 1)   # clamp: no OOB VMEM read
    row = h_scratch[pl.ds(t, 1), :]                       # [1, H] dynamic row read
    if normalize:
        nrm = jnp.sqrt(jnp.sum(row * row, axis=-1, keepdims=True))
        row = row / jnp.maximum(nrm, norm_eps)            # F.normalize, exact divide
    if HP > H:
        row = jnp.concatenate(
            [row, jnp.zeros((1, HP - H), jnp.float32)], axis=-1)
    o_ref[0] = row                                        # lane-dense [1, HP] store


# --------------------------- parameter preparation ---------------------------

def init_params(key, vocab=100, type_vocab=2, max_pos=64, H=32, nh=4,
                inter=64, n_layers=2):
    def normal(k, shape):
        return 0.02 * jax.random.normal(k, shape, dtype=jnp.float32)

    keys = jax.random.split(key, 3 + n_layers)
    params = {
        "num_heads": nh,
        "word_emb": normal(keys[0], (vocab, H)),
        "pos_emb": normal(keys[1], (max_pos, H)),
        "type_emb": normal(keys[2], (type_vocab, H)),
        "emb_ln_g": jnp.ones((H,), jnp.float32),
        "emb_ln_b": jnp.zeros((H,), jnp.float32),
        "layers": [],
    }
    for li in range(n_layers):
        ks = jax.random.split(keys[3 + li], 8)
        wq, wk, wv = normal(ks[0], (H, H)), normal(ks[1], (H, H)), normal(ks[2], (H, H))
        params["layers"].append({
            "wqkv": jnp.concatenate([wq, wk, wv], axis=1),   # fused QKV weight [H, 3H]
            "bqkv": jnp.zeros((3 * H,), jnp.float32),
            "wo": normal(ks[3], (H, H)), "bo": jnp.zeros((H,), jnp.float32),
            "ln1_g": jnp.ones((H,), jnp.float32), "ln1_b": jnp.zeros((H,), jnp.float32),
            "w1": normal(ks[4], (H, inter)), "b1": jnp.zeros((inter,), jnp.float32),
            "w2": normal(ks[5], (inter, H)), "b2": jnp.zeros((H,), jnp.float32),
            "ln2_g": jnp.ones((H,), jnp.float32), "ln2_b": jnp.zeros((H,), jnp.float32),
        })
    return params


def _pack_layer_params(layers):
    """Stack per-layer params on a leading axis; matmul weights in bf16."""
    def stack(k):
        return jnp.stack([lp[k] for lp in layers], axis=0)

    return {
        "wqkv": stack("wqkv").astype(jnp.bfloat16),    # [L, H, 3H]
        "bqkv": stack("bqkv")[:, None, :],             # [L, 1, 3H] f32
        "wo": stack("wo").astype(jnp.bfloat16),        # [L, H, H]
        "bo": stack("bo")[:, None, :],
        "ln1_g": stack("ln1_g")[:, None, :],
        "ln1_b": stack("ln1_b")[:, None, :],
        "w1": stack("w1").astype(jnp.bfloat16),        # [L, H, I]
        "b1": stack("b1")[:, None, :],
        "w2": stack("w2").astype(jnp.bfloat16),        # [L, I, H]
        "b2": stack("b2")[:, None, :],
        "ln2_g": stack("ln2_g")[:, None, :],
        "ln2_b": stack("ln2_b")[:, None, :],
    }


# ------------------------------ BaseNet forward ------------------------------

def basenet_forward(params, inputs, layer=-1, normalization="true"):
    input_ids = inputs["input_ids"]
    attention_mask = inputs["attention_mask"]
    token_type_ids = inputs.get("token_type_ids", None)
    target_tidx = inputs["target_tidx"].astype(jnp.int32)

    B, S = input_ids.shape
    H = params["word_emb"].shape[1]
    nh = params["num_heads"]
    n_layers = len(params["layers"])
    # hidden_states[layer]: index 0 == embedding output, index k == after k layers.
    n_active = layer % (n_layers + 1)

    # Embedding-table lookups are gathers -> plain JAX glue.  Everything
    # downstream (embedding LayerNorm, all encoder layers, target-token gather,
    # L2 normalize) is ONE pallas_call so activations never round-trip HBM.
    emb = params["word_emb"][input_ids] + params["pos_emb"][:S][None, :, :]
    if token_type_ids is not None:
        emb = emb + params["type_emb"][token_type_ids]
    emb = emb.astype(jnp.float32)

    mask_bias = ((1.0 - attention_mask.astype(jnp.float32)) * -1e9).reshape(B, 1, S)

    packed = _pack_layer_params(params["layers"])
    HP = max(LANES, ((H + LANES - 1) // LANES) * LANES)   # lane-dense output width

    weights = [
        params["emb_ln_g"].reshape(1, H).astype(jnp.float32),
        params["emb_ln_b"].reshape(1, H).astype(jnp.float32),
        packed["wqkv"], packed["bqkv"], packed["wo"], packed["bo"],
        packed["ln1_g"], packed["ln1_b"],
        packed["w1"], packed["b1"], packed["w2"], packed["b2"],
        packed["ln2_g"], packed["ln2_b"],
    ]

    def whole(a):
        # Constant block index -> weights are DMA'd to VMEM once and stay resident.
        # TODO(synk): at BERT-base dims on v7x (64 MiB VMEM) these specs would need
        # K-tiling along an "arbitrary" grid axis / pl.Buffered(1) to fit.
        return pl.BlockSpec(a.shape, lambda b, t, nd=a.ndim: (0,) * nd)

    kernel = functools.partial(
        _basenet_kernel, n_active=n_active, nh=nh,
        scale=1.0 / ((H // nh) ** 0.5), eps=1e-12,
        normalize=(normalization == "true"), norm_eps=1e-12)

    out = pl.pallas_call(
        kernel,
        grid_spec=pltpu.PrefetchScalarGridSpec(
            num_scalar_prefetch=1,                      # target_tidx -> SMEM
            grid=(B,),
            in_specs=[pl.BlockSpec((1, 1, S), lambda b, t: (b, 0, 0)),   # mask bias
                      pl.BlockSpec((1, S, H), lambda b, t: (b, 0, 0))]   # embeddings
                     + [whole(w) for w in weights],
            out_specs=pl.BlockSpec((1, 1, HP), lambda b, t: (b, 0, 0)),
            scratch_shapes=[pltpu.VMEM((S, H), jnp.float32)]),
        out_shape=jax.ShapeDtypeStruct((B, 1, HP), jnp.float32),
        compiler_params=pltpu.CompilerParams(
            dimension_semantics=("parallel",),          # both v7x TCs get work
            vmem_limit_bytes=32 * 1024 * 1024),
    )(target_tidx, mask_bias, emb, *weights)

    return out.reshape(B, HP)[:, :H]


# ---------------------------------- main -------------------------------------

if __name__ == "__main__":
    B, S, H, nh, inter, n_layers, vocab = 2, 8, 32, 4, 64, 2, 100

    key = jax.random.PRNGKey(0)
    kp, k1 = jax.random.split(key)
    params = init_params(kp, vocab=vocab, max_pos=64, H=H, nh=nh,
                         inter=inter, n_layers=n_layers)

    inputs = {
        "input_ids": jax.random.randint(k1, (B, S), 0, vocab, dtype=jnp.int32),
        "attention_mask": jnp.ones((B, S), jnp.int32),
        "token_type_ids": jnp.zeros((B, S), jnp.int32),
        "target_tidx": jnp.array([2, 5], jnp.int32),
    }

    out = basenet_forward(params, inputs, layer=-1, normalization="true")
    out = jax.block_until_ready(out)
    assert out.shape == (B, H) and out.dtype == jnp.float32
    assert bool(jnp.all(jnp.isfinite(out)))
    # L2-normalized rows should have unit norm (exact divide used in-kernel).
    assert bool(jnp.allclose(jnp.linalg.norm(out, axis=-1), 1.0, atol=1e-3))
    print("KERNEL_OK")
</pallas_src>

<mosaic_0001>
module attributes {stable_mosaic.version = 11 : i64} {
  func.func @_basenet_kernel(%arg0: i32, %arg1: memref<2xi32, #tpu.memory_space<smem>>, %arg2: memref<1x1x8xf32, #tpu.memory_space<vmem>>, %arg3: memref<1x8x32xf32, #tpu.memory_space<vmem>>, %arg4: memref<1x32xf32, #tpu.memory_space<vmem>>, %arg5: memref<1x32xf32, #tpu.memory_space<vmem>>, %arg6: memref<2x32x96xbf16, #tpu.memory_space<vmem>>, %arg7: memref<2x1x96xf32, #tpu.memory_space<vmem>>, %arg8: memref<2x32x32xbf16, #tpu.memory_space<vmem>>, %arg9: memref<2x1x32xf32, #tpu.memory_space<vmem>>, %arg10: memref<2x1x32xf32, #tpu.memory_space<vmem>>, %arg11: memref<2x1x32xf32, #tpu.memory_space<vmem>>, %arg12: memref<2x32x64xbf16, #tpu.memory_space<vmem>>, %arg13: memref<2x1x64xf32, #tpu.memory_space<vmem>>, %arg14: memref<2x64x32xbf16, #tpu.memory_space<vmem>>, %arg15: memref<2x1x32xf32, #tpu.memory_space<vmem>>, %arg16: memref<2x1x32xf32, #tpu.memory_space<vmem>>, %arg17: memref<2x1x32xf32, #tpu.memory_space<vmem>>, %arg18: memref<1x1x128xf32, #tpu.memory_space<vmem>>, %arg19: memref<8x32xf32, #tpu.memory_space<vmem>>) attributes {dimension_semantics = [#tpu.dimension_semantics<parallel>], iteration_bounds = array<i64: 2>, scalar_prefetch = 1 : i64, scratch_operands = 1 : i64, tpu.core_type = #tpu.core_type<tc>, window_params = [{transform_indices = @transform_0, window_bounds = array<i64: 1, 1, 8>}, {transform_indices = @transform_1, window_bounds = array<i64: 1, 8, 32>}, {pipeline_mode = #tpu.pipeline_mode<synchronous>, transform_indices = @transform_2, window_bounds = array<i64: 1, 32>}, {pipeline_mode = #tpu.pipeline_mode<synchronous>, transform_indices = @transform_3, window_bounds = array<i64: 1, 32>}, {pipeline_mode = #tpu.pipeline_mode<synchronous>, transform_indices = @transform_4, window_bounds = array<i64: 2, 32, 96>}, {pipeline_mode = #tpu.pipeline_mode<synchronous>, transform_indices = @transform_5, window_bounds = array<i64: 2, 1, 96>}, {pipeline_mode = #tpu.pipeline_mode<synchronous>, transform_indices = @transform_6, window_bounds = array<i64: 2, 32, 32>}, {pipeline_mode = #tpu.pipeline_mode<synchronous>, transform_indices = @transform_7, window_bounds = array<i64: 2, 1, 32>}, {pipeline_mode = #tpu.pipeline_mode<synchronous>, transform_indices = @transform_8, window_bounds = array<i64: 2, 1, 32>}, {pipeline_mode = #tpu.pipeline_mode<synchronous>, transform_indices = @transform_9, window_bounds = array<i64: 2, 1, 32>}, {pipeline_mode = #tpu.pipeline_mode<synchronous>, transform_indices = @transform_10, window_bounds = array<i64: 2, 32, 64>}, {pipeline_mode = #tpu.pipeline_mode<synchronous>, transform_indices = @transform_11, window_bounds = array<i64: 2, 1, 64>}, {pipeline_mode = #tpu.pipeline_mode<synchronous>, transform_indices = @transform_12, window_bounds = array<i64: 2, 64, 32>}, {pipeline_mode = #tpu.pipeline_mode<synchronous>, transform_indices = @transform_13, window_bounds = array<i64: 2, 1, 32>}, {pipeline_mode = #tpu.pipeline_mode<synchronous>, transform_indices = @transform_14, window_bounds = array<i64: 2, 1, 32>}, {pipeline_mode = #tpu.pipeline_mode<synchronous>, transform_indices = @transform_15, window_bounds = array<i64: 2, 1, 32>}, {transform_indices = @transform_16, window_bounds = array<i64: 1, 1, 128>}]} {
    %c0 = arith.constant 0 : index
    %c0_0 = arith.constant 0 : index
    %c0_1 = arith.constant 0 : index
    %0 = vector.load %arg2[%c0, %c0_0, %c0_1] : memref<1x1x8xf32, #tpu.memory_space<vmem>>, vector<1x1x8xf32>
    %1 = vector.shape_cast %0 : vector<1x1x8xf32> to vector<1x8xf32>
    %c0_2 = arith.constant 0 : index
    %c0_3 = arith.constant 0 : index
    %c0_4 = arith.constant 0 : index
    %2 = vector.load %arg3[%c0_2, %c0_3, %c0_4] : memref<1x8x32xf32, #tpu.memory_space<vmem>>, vector<1x8x32xf32>
    %3 = vector.shape_cast %2 : vector<1x8x32xf32> to vector<8x32xf32>
    %c0_5 = arith.constant 0 : index
    %c0_6 = arith.constant 0 : index
    %4 = vector.load %arg4[%c0_5, %c0_6] : memref<1x32xf32, #tpu.memory_space<vmem>>, vector<1x32xf32>
    %c0_7 = arith.constant 0 : index
    %c0_8 = arith.constant 0 : index
    %5 = vector.load %arg5[%c0_7, %c0_8] : memref<1x32xf32, #tpu.memory_space<vmem>>, vector<1x32xf32>
    %cst = arith.constant dense<0.000000e+00> : vector<8xf32>
    %6 = vector.multi_reduction <add>, %3, %cst [1] : vector<8x32xf32> to vector<8xf32>
    %7 = vector.shape_cast %6 : vector<8xf32> to vector<8x1xf32>
    %cst_9 = arith.constant 3.200000e+01 : f32
    %8 = vector.broadcast %cst_9 : f32 to vector<8x1xf32>
    %9 = arith.divf %7, %8 : vector<8x1xf32>
    %10 = vector.broadcast %9 : vector<8x1xf32> to vector<8x32xf32>
    %11 = arith.subf %3, %10 : vector<8x32xf32>
    %12 = arith.mulf %11, %11 : vector<8x32xf32>
    %cst_10 = arith.constant dense<0.000000e+00> : vector<8xf32>
    %13 = vector.multi_reduction <add>, %12, %cst_10 [1] : vector<8x32xf32> to vector<8xf32>
    %14 = vector.shape_cast %13 : vector<8xf32> to vector<8x1xf32>
    %cst_11 = arith.constant 3.200000e+01 : f32
    %15 = vector.broadcast %cst_11 : f32 to vector<8x1xf32>
    %16 = arith.divf %14, %15 : vector<8x1xf32>
    %cst_12 = arith.constant 9.99999996E-13 : f32
    %17 = vector.broadcast %cst_12 : f32 to vector<8x1xf32>
    %18 = arith.addf %16, %17 : vector<8x1xf32>
    %19 = math.rsqrt %18 : vector<8x1xf32>
    %20 = vector.broadcast %19 : vector<8x1xf32> to vector<8x32xf32>
    %21 = arith.mulf %11, %20 : vector<8x32xf32>
    %22 = vector.broadcast %4 : vector<1x32xf32> to vector<8x32xf32>
    %23 = arith.mulf %21, %22 : vector<8x32xf32>
    %24 = vector.broadcast %5 : vector<1x32xf32> to vector<8x32xf32>
    %25 = arith.addf %23, %24 : vector<8x32xf32>
    %26 = arith.truncf %25 : vector<8x32xf32> to vector<8x32xbf16>
    %c0_13 = arith.constant 0 : index
    %c0_14 = arith.constant 0 : index
    %c0_15 = arith.constant 0 : index
    %27 = vector.load %arg6[%c0_13, %c0_14, %c0_15] : memref<2x32x96xbf16, #tpu.memory_space<vmem>>, vector<1x32x96xbf16>
    %28 = vector.shape_cast %27 : vector<1x32x96xbf16> to vector<32x96xbf16>
    %cst_16 = arith.constant dense<0.000000e+00> : vector<8x96xf32>
    %29 = tpu.matmul %26, %28, %cst_16 {dimension_numbers = #tpu.dot_dimension_numbers<[1], [0], [0], [1], [0, 0, 1, 1], [], []>} : vector<8x32xbf16>, vector<32x96xbf16>, vector<8x96xf32> -> vector<8x96xf32>
    %c0_17 = arith.constant 0 : index
    %c0_18 = arith.constant 0 : index
    %c0_19 = arith.constant 0 : index
    %30 = vector.load %arg7[%c0_17, %c0_18, %c0_19] : memref<2x1x96xf32, #tpu.memory_space<vmem>>, vector<1x1x96xf32>
    %31 = vector.shape_cast %30 : vector<1x1x96xf32> to vector<1x96xf32>
    %32 = vector.broadcast %31 : vector<1x96xf32> to vector<8x96xf32>
    %33 = arith.addf %29, %32 : vector<8x96xf32>
    %34 = arith.truncf %33 : vector<8x96xf32> to vector<8x96xbf16>
    %35 = vector.extract_strided_slice %34 {offsets = [0, 0], sizes = [8, 8], strides = [1, 1]} : vector<8x96xbf16> to vector<8x8xbf16>
    %36 = vector.extract_strided_slice %34 {offsets = [0, 32], sizes = [8, 8], strides = [1, 1]} : vector<8x96xbf16> to vector<8x8xbf16>
    %37 = vector.extract_strided_slice %34 {offsets = [0, 64], sizes = [8, 8], strides = [1, 1]} : vector<8x96xbf16> to vector<8x8xbf16>
    %cst_20 = arith.constant dense<0.000000e+00> : vector<8x8xf32>
    %38 = tpu.matmul %35, %36, %cst_20 {dimension_numbers = #tpu.dot_dimension_numbers<[1], [1], [0], [0], [0, 0, 1, 0], [], []>} : vector<8x8xbf16>, vector<8x8xbf16>, vector<8x8xf32> -> vector<8x8xf32>
    %cst_21 = arith.constant 0.353553385 : f32
    %39 = vector.broadcast %cst_21 : f32 to vector<8x8xf32>
    %40 = arith.mulf %38, %39 : vector<8x8xf32>
    %41 = vector.broadcast %1 : vector<1x8xf32> to vector<8x8xf32>
    %42 = arith.addf %40, %41 : vector<8x8xf32>
    %cst_22 = arith.constant dense<0xFF800000> : vector<8xf32>
    %43 = vector.multi_reduction <maximumf>, %42, %cst_22 [1] : vector<8x8xf32> to vector<8xf32>
    %44 = vector.shape_cast %43 : vector<8xf32> to vector<8x1xf32>
    %45 = vector.broadcast %44 : vector<8x1xf32> to vector<8x8xf32>
    %46 = arith.subf %42, %45 : vector<8x8xf32>
    %47 = math.exp %46 : vector<8x8xf32>
    %cst_23 = arith.constant dense<0.000000e+00> : vector<8xf32>
    %48 = vector.multi_reduction <add>, %47, %cst_23 [1] : vector<8x8xf32> to vector<8xf32>
    %49 = vector.shape_cast %48 : vector<8xf32> to vector<8x1xf32>
    %50 = vector.broadcast %49 : vector<8x1xf32> to vector<8x8xf32>
    %51 = arith.divf %47, %50 : vector<8x8xf32>
    %52 = arith.truncf %51 : vector<8x8xf32> to vector<8x8xbf16>
    %cst_24 = arith.constant dense<0.000000e+00> : vector<8x8xf32>
    %53 = tpu.matmul %52, %37, %cst_24 {dimension_numbers = #tpu.dot_dimension_numbers<[1], [0], [0], [1], [0, 0, 1, 1], [], []>} : vector<8x8xbf16>, vector<8x8xbf16>, vector<8x8xf32> -> vector<8x8xf32>
    %54 = vector.extract_strided_slice %34 {offsets = [0, 8], sizes = [8, 8], strides = [1, 1]} : vector<8x96xbf16> to vector<8x8xbf16>
    %55 = vector.extract_strided_slice %34 {offsets = [0, 40], sizes = [8, 8], strides = [1, 1]} : vector<8x96xbf16> to vector<8x8xbf16>
    %56 = vector.extract_strided_slice %34 {offsets = [0, 72], sizes = [8, 8], strides = [1, 1]} : vector<8x96xbf16> to vector<8x8xbf16>
    %cst_25 = arith.constant dense<0.000000e+00> : vector<8x8xf32>
    %57 = tpu.matmul %54, %55, %cst_25 {dimension_numbers = #tpu.dot_dimension_numbers<[1], [1], [0], [0], [0, 0, 1, 0], [], []>} : vector<8x8xbf16>, vector<8x8xbf16>, vector<8x8xf32> -> vector<8x8xf32>
    %cst_26 = arith.constant 0.353553385 : f32
    %58 = vector.broadcast %cst_26 : f32 to vector<8x8xf32>
    %59 = arith.mulf %57, %58 : vector<8x8xf32>
    %60 = vector.broadcast %1 : vector<1x8xf32> to vector<8x8xf32>
    %61 = arith.addf %59, %60 : vector<8x8xf32>
    %cst_27 = arith.constant dense<0xFF800000> : vector<8xf32>
    %62 = vector.multi_reduction <maximumf>, %61, %cst_27 [1] : vector<8x8xf32> to vector<8xf32>
    %63 = vector.shape_cast %62 : vector<8xf32> to vector<8x1xf32>
    %64 = vector.broadcast %63 : vector<8x1xf32> to vector<8x8xf32>
    %65 = arith.subf %61, %64 : vector<8x8xf32>
    %66 = math.exp %65 : vector<8x8xf32>
    %cst_28 = arith.constant dense<0.000000e+00> : vector<8xf32>
    %67 = vector.multi_reduction <add>, %66, %cst_28 [1] : vector<8x8xf32> to vector<8xf32>
    %68 = vector.shape_cast %67 : vector<8xf32> to vector<8x1xf32>
    %69 = vector.broadcast %68 : vector<8x1xf32> to vector<8x8xf32>
    %70 = arith.divf %66, %69 : vector<8x8xf32>
    %71 = arith.truncf %70 : vector<8x8xf32> to vector<8x8xbf16>
    %cst_29 = arith.constant dense<0.000000e+00> : vector<8x8xf32>
    %72 = tpu.matmul %71, %56, %cst_29 {dimension_numbers = #tpu.dot_dimension_numbers<[1], [0], [0], [1], [0, 0, 1, 1], [], []>} : vector<8x8xbf16>, vector<8x8xbf16>, vector<8x8xf32> -> vector<8x8xf32>
    %73 = vector.extract_strided_slice %34 {offsets = [0, 16], sizes = [8, 8], strides = [1, 1]} : vector<8x96xbf16> to vector<8x8xbf16>
    %74 = vector.extract_strided_slice %34 {offsets = [0, 48], sizes = [8, 8], strides = [1, 1]} : vector<8x96xbf16> to vector<8x8xbf16>
    %75 = vector.extract_strided_slice %34 {offsets = [0, 80], sizes = [8, 8], strides = [1, 1]} : vector<8x96xbf16> to vector<8x8xbf16>
    %cst_30 = arith.constant dense<0.000000e+00> : vector<8x8xf32>
    %76 = tpu.matmul %73, %74, %cst_30 {dimension_numbers = #tpu.dot_dimension_numbers<[1], [1], [0], [0], [0, 0, 1, 0], [], []>} : vector<8x8xbf16>, vector<8x8xbf16>, vector<8x8xf32> -> vector<8x8xf32>
    %cst_31 = arith.constant 0.353553385 : f32
    %77 = vector.broadcast %cst_31 : f32 to vector<8x8xf32>
    %78 = arith.mulf %76, %77 : vector<8x8xf32>
    %79 = vector.broadcast %1 : vector<1x8xf32> to vector<8x8xf32>
    %80 = arith.addf %78, %79 : vector<8x8xf32>
    %cst_32 = arith.constant dense<0xFF800000> : vector<8xf32>
    %81 = vector.multi_reduction <maximumf>, %80, %cst_32 [1] : vector<8x8xf32> to vector<8xf32>
    %82 = vector.shape_cast %81 : vector<8xf32> to vector<8x1xf32>
    %83 = vector.broadcast %82 : vector<8x1xf32> to vector<8x8xf32>
    %84 = arith.subf %80, %83 : vector<8x8xf32>
    %85 = math.exp %84 : vector<8x8xf32>
    %cst_33 = arith.constant dense<0.000000e+00> : vector<8xf32>
    %86 = vector.multi_reduction <add>, %85, %cst_33 [1] : vector<8x8xf32> to vector<8xf32>
    %87 = vector.shape_cast %86 : vector<8xf32> to vector<8x1xf32>
    %88 = vector.broadcast %87 : vector<8x1xf32> to vector<8x8xf32>
    %89 = arith.divf %85, %88 : vector<8x8xf32>
    %90 = arith.truncf %89 : vector<8x8xf32> to vector<8x8xbf16>
    %cst_34 = arith.constant dense<0.000000e+00> : vector<8x8xf32>
    %91 = tpu.matmul %90, %75, %cst_34 {dimension_numbers = #tpu.dot_dimension_numbers<[1], [0], [0], [1], [0, 0, 1, 1], [], []>} : vector<8x8xbf16>, vector<8x8xbf16>, vector<8x8xf32> -> vector<8x8xf32>
    %92 = vector.extract_strided_slice %34 {offsets = [0, 24], sizes = [8, 8], strides = [1, 1]} : vector<8x96xbf16> to vector<8x8xbf16>
    %93 = vector.extract_strided_slice %34 {offsets = [0, 56], sizes = [8, 8], strides = [1, 1]} : vector<8x96xbf16> to vector<8x8xbf16>
    %94 = vector.extract_strided_slice %34 {offsets = [0, 88], sizes = [8, 8], strides = [1, 1]} : vector<8x96xbf16> to vector<8x8xbf16>
    %cst_35 = arith.constant dense<0.000000e+00> : vector<8x8xf32>
    %95 = tpu.matmul %92, %93, %cst_35 {dimension_numbers = #tpu.dot_dimension_numbers<[1], [1], [0], [0], [0, 0, 1, 0], [], []>} : vector<8x8xbf16>, vector<8x8xbf16>, vector<8x8xf32> -> vector<8x8xf32>
    %cst_36 = arith.constant 0.353553385 : f32
    %96 = vector.broadcast %cst_36 : f32 to vector<8x8xf32>
    %97 = arith.mulf %95, %96 : vector<8x8xf32>
    %98 = vector.broadcast %1 : vector<1x8xf32> to vector<8x8xf32>
    %99 = arith.addf %97, %98 : vector<8x8xf32>
    %cst_37 = arith.constant dense<0xFF800000> : vector<8xf32>
    %100 = vector.multi_reduction <maximumf>, %99, %cst_37 [1] : vector<8x8xf32> to vector<8xf32>
    %101 = vector.shape_cast %100 : vector<8xf32> to vector<8x1xf32>
    %102 = vector.broadcast %101 : vector<8x1xf32> to vector<8x8xf32>
    %103 = arith.subf %99, %102 : vector<8x8xf32>
    %104 = math.exp %103 : vector<8x8xf32>
    %cst_38 = arith.constant dense<0.000000e+00> : vector<8xf32>
    %105 = vector.multi_reduction <add>, %104, %cst_38 [1] : vector<8x8xf32> to vector<8xf32>
    %106 = vector.shape_cast %105 : vector<8xf32> to vector<8x1xf32>
    %107 = vector.broadcast %106 : vector<8x1xf32> to vector<8x8xf32>
    %108 = arith.divf %104, %107 : vector<8x8xf32>
    %109 = arith.truncf %108 : vector<8x8xf32> to vector<8x8xbf16>
    %cst_39 = arith.constant dense<0.000000e+00> : vector<8x8xf32>
    %110 = tpu.matmul %109, %94, %cst_39 {dimension_numbers = #tpu.dot_dimension_numbers<[1], [0], [0], [1], [0, 0, 1, 1], [], []>} : vector<8x8xbf16>, vector<8x8xbf16>, vector<8x8xf32> -> vector<8x8xf32>
    %111 = tpu.concatenate %53, %72, %91, %110 in 1 : vector<8x8xf32>, vector<8x8xf32>, vector<8x8xf32>, vector<8x8xf32> -> vector<8x32xf32>
    %112 = arith.truncf %111 : vector<8x32xf32> to vector<8x32xbf16>
    %c0_40 = arith.constant 0 : index
    %c0_41 = arith.constant 0 : index
    %c0_42 = arith.constant 0 : index
    %113 = vector.load %arg8[%c0_40, %c0_41, %c0_42] : memref<2x32x32xbf16, #tpu.memory_space<vmem>>, vector<1x32x32xbf16>
    %114 = vector.shape_cast %113 : vector<1x32x32xbf16> to vector<32x32xbf16>
    %cst_43 = arith.constant dense<0.000000e+00> : vector<8x32xf32>
    %115 = tpu.matmul %112, %114, %cst_43 {dimension_numbers = #tpu.dot_dimension_numbers<[1], [0], [0], [1], [0, 0, 1, 1], [], []>} : vector<8x32xbf16>, vector<32x32xbf16>, vector<8x32xf32> -> vector<8x32xf32>
    %c0_44 = arith.constant 0 : index
    %c0_45 = arith.constant 0 : index
    %c0_46 = arith.constant 0 : index
    %116 = vector.load %arg9[%c0_44, %c0_45, %c0_46] : memref<2x1x32xf32, #tpu.memory_space<vmem>>, vector<1x1x32xf32>
    %117 = vector.shape_cast %116 : vector<1x1x32xf32> to vector<1x32xf32>
    %118 = vector.broadcast %117 : vector<1x32xf32> to vector<8x32xf32>
    %119 = arith.addf %115, %118 : vector<8x32xf32>
    %120 = arith.addf %119, %25 : vector<8x32xf32>
    %c0_47 = arith.constant 0 : index
    %c0_48 = arith.constant 0 : index
    %c0_49 = arith.constant 0 : index
    %121 = vector.load %arg10[%c0_47, %c0_48, %c0_49] : memref<2x1x32xf32, #tpu.memory_space<vmem>>, vector<1x1x32xf32>
    %122 = vector.shape_cast %121 : vector<1x1x32xf32> to vector<1x32xf32>
    %c0_50 = arith.constant 0 : index
    %c0_51 = arith.constant 0 : index
    %c0_52 = arith.constant 0 : index
    %123 = vector.load %arg11[%c0_50, %c0_51, %c0_52] : memref<2x1x32xf32, #tpu.memory_space<vmem>>, vector<1x1x32xf32>
    %124 = vector.shape_cast %123 : vector<1x1x32xf32> to vector<1x32xf32>
    %cst_53 = arith.constant dense<0.000000e+00> : vector<8xf32>
    %125 = vector.multi_reduction <add>, %120, %cst_53 [1] : vector<8x32xf32> to vector<8xf32>
    %126 = vector.shape_cast %125 : vector<8xf32> to vector<8x1xf32>
    %cst_54 = arith.constant 3.200000e+01 : f32
    %127 = vector.broadcast %cst_54 : f32 to vector<8x1xf32>
    %128 = arith.divf %126, %127 : vector<8x1xf32>
    %129 = vector.broadcast %128 : vector<8x1xf32> to vector<8x32xf32>
    %130 = arith.subf %120, %129 : vector<8x32xf32>
    %131 = arith.mulf %130, %130 : vector<8x32xf32>
    %cst_55 = arith.constant dense<0.000000e+00> : vector<8xf32>
    %132 = vector.multi_reduction <add>, %131, %cst_55 [1] : vector<8x32xf32> to vector<8xf32>
    %133 = vector.shape_cast %132 : vector<8xf32> to vector<8x1xf32>
    %cst_56 = arith.constant 3.200000e+01 : f32
    %134 = vector.broadcast %cst_56 : f32 to vector<8x1xf32>
    %135 = arith.divf %133, %134 : vector<8x1xf32>
    %cst_57 = arith.constant 9.99999996E-13 : f32
    %136 = vector.broadcast %cst_57 : f32 to vector<8x1xf32>
    %137 = arith.addf %135, %136 : vector<8x1xf32>
    %138 = math.rsqrt %137 : vector<8x1xf32>
    %139 = vector.broadcast %138 : vector<8x1xf32> to vector<8x32xf32>
    %140 = arith.mulf %130, %139 : vector<8x32xf32>
    %141 = vector.broadcast %122 : vector<1x32xf32> to vector<8x32xf32>
    %142 = arith.mulf %140, %141 : vector<8x32xf32>
    %143 = vector.broadcast %124 : vector<1x32xf32> to vector<8x32xf32>
    %144 = arith.addf %142, %143 : vector<8x32xf32>
    %145 = arith.truncf %144 : vector<8x32xf32> to vector<8x32xbf16>
    %c0_58 = arith.constant 0 : index
    %c0_59 = arith.constant 0 : index
    %c0_60 = arith.constant 0 : index
    %146 = vector.load %arg12[%c0_58, %c0_59, %c0_60] : memref<2x32x64xbf16, #tpu.memory_space<vmem>>, vector<1x32x64xbf16>
    %147 = vector.shape_cast %146 : vector<1x32x64xbf16> to vector<32x64xbf16>
    %cst_61 = arith.constant dense<0.000000e+00> : vector<8x64xf32>
    %148 = tpu.matmul %145, %147, %cst_61 {dimension_numbers = #tpu.dot_dimension_numbers<[1], [0], [0], [1], [0, 0, 1, 1], [], []>} : vector<8x32xbf16>, vector<32x64xbf16>, vector<8x64xf32> -> vector<8x64xf32>
    %c0_62 = arith.constant 0 : index
    %c0_63 = arith.constant 0 : index
    %c0_64 = arith.constant 0 : index
    %149 = vector.load %arg13[%c0_62, %c0_63, %c0_64] : memref<2x1x64xf32, #tpu.memory_space<vmem>>, vector<1x1x64xf32>
    %150 = vector.shape_cast %149 : vector<1x1x64xf32> to vector<1x64xf32>
    %151 = vector.broadcast %150 : vector<1x64xf32> to vector<8x64xf32>
    %152 = arith.addf %148, %151 : vector<8x64xf32>
    %cst_65 = arith.constant 5.000000e-01 : f32
    %153 = vector.broadcast %cst_65 : f32 to vector<8x64xf32>
    %154 = arith.mulf %153, %152 : vector<8x64xf32>
    %cst_66 = arith.constant 4.471500e-02 : f32
    %155 = vector.broadcast %cst_66 : f32 to vector<8x64xf32>
    %156 = arith.mulf %155, %152 : vector<8x64xf32>
    %157 = arith.mulf %156, %152 : vector<8x64xf32>
    %158 = arith.mulf %157, %152 : vector<8x64xf32>
    %159 = arith.addf %152, %158 : vector<8x64xf32>
    %cst_67 = arith.constant 0.797884583 : f32
    %160 = vector.broadcast %cst_67 : f32 to vector<8x64xf32>
    %161 = arith.mulf %160, %159 : vector<8x64xf32>
    %162 = math.tanh %161 : vector<8x64xf32>
    %cst_68 = arith.constant 1.000000e+00 : f32
    %163 = vector.broadcast %cst_68 : f32 to vector<8x64xf32>
    %164 = arith.addf %163, %162 : vector<8x64xf32>
    %165 = arith.mulf %154, %164 : vector<8x64xf32>
    %166 = arith.truncf %165 : vector<8x64xf32> to vector<8x64xbf16>
    %c0_69 = arith.constant 0 : index
    %c0_70 = arith.constant 0 : index
    %c0_71 = arith.constant 0 : index
    %167 = vector.load %arg14[%c0_69, %c0_70, %c0_71] : memref<2x64x32xbf16, #tpu.memory_space<vmem>>, vector<1x64x32xbf16>
    %168 = vector.shape_cast %167 : vector<1x64x32xbf16> to vector<64x32xbf16>
    %cst_72 = arith.constant dense<0.000000e+00> : vector<8x32xf32>
    %169 = tpu.matmul %166, %168, %cst_72 {dimension_numbers = #tpu.dot_dimension_numbers<[1], [0], [0], [1], [0, 0, 1, 1], [], []>} : vector<8x64xbf16>, vector<64x32xbf16>, vector<8x32xf32> -> vector<8x32xf32>
    %c0_73 = arith.constant 0 : index
    %c0_74 = arith.constant 0 : index
    %c0_75 = arith.constant 0 : index
    %170 = vector.load %arg15[%c0_73, %c0_74, %c0_75] : memref<2x1x32xf32, #tpu.memory_space<vmem>>, vector<1x1x32xf32>
    %171 = vector.shape_cast %170 : vector<1x1x32xf32> to vector<1x32xf32>
    %172 = vector.broadcast %171 : vector<1x32xf32> to vector<8x32xf32>
    %173 = arith.addf %169, %172 : vector<8x32xf32>
    %174 = arith.addf %173, %144 : vector<8x32xf32>
    %c0_76 = arith.constant 0 : index
    %c0_77 = arith.constant 0 : index
    %c0_78 = arith.constant 0 : index
    %175 = vector.load %arg16[%c0_76, %c0_77, %c0_78] : memref<2x1x32xf32, #tpu.memory_space<vmem>>, vector<1x1x32xf32>
    %176 = vector.shape_cast %175 : vector<1x1x32xf32> to vector<1x32xf32>
    %c0_79 = arith.constant 0 : index
    %c0_80 = arith.constant 0 : index
    %c0_81 = arith.constant 0 : index
    %177 = vector.load %arg17[%c0_79, %c0_80, %c0_81] : memref<2x1x32xf32, #tpu.memory_space<vmem>>, vector<1x1x32xf32>
    %178 = vector.shape_cast %177 : vector<1x1x32xf32> to vector<1x32xf32>
    %cst_82 = arith.constant dense<0.000000e+00> : vector<8xf32>
    %179 = vector.multi_reduction <add>, %174, %cst_82 [1] : vector<8x32xf32> to vector<8xf32>
    %180 = vector.shape_cast %179 : vector<8xf32> to vector<8x1xf32>
    %cst_83 = arith.constant 3.200000e+01 : f32
    %181 = vector.broadcast %cst_83 : f32 to vector<8x1xf32>
    %182 = arith.divf %180, %181 : vector<8x1xf32>
    %183 = vector.broadcast %182 : vector<8x1xf32> to vector<8x32xf32>
    %184 = arith.subf %174, %183 : vector<8x32xf32>
    %185 = arith.mulf %184, %184 : vector<8x32xf32>
    %cst_84 = arith.constant dense<0.000000e+00> : vector<8xf32>
    %186 = vector.multi_reduction <add>, %185, %cst_84 [1] : vector<8x32xf32> to vector<8xf32>
    %187 = vector.shape_cast %186 : vector<8xf32> to vector<8x1xf32>
    %cst_85 = arith.constant 3.200000e+01 : f32
    %188 = vector.broadcast %cst_85 : f32 to vector<8x1xf32>
    %189 = arith.divf %187, %188 : vector<8x1xf32>
    %cst_86 = arith.constant 9.99999996E-13 : f32
    %190 = vector.broadcast %cst_86 : f32 to vector<8x1xf32>
    %191 = arith.addf %189, %190 : vector<8x1xf32>
    %192 = math.rsqrt %191 : vector<8x1xf32>
    %193 = vector.broadcast %192 : vector<8x1xf32> to vector<8x32xf32>
    %194 = arith.mulf %184, %193 : vector<8x32xf32>
    %195 = vector.broadcast %176 : vector<1x32xf32> to vector<8x32xf32>
    %196 = arith.mulf %194, %195 : vector<8x32xf32>
    %197 = vector.broadcast %178 : vector<1x32xf32> to vector<8x32xf32>
    %198 = arith.addf %196, %197 : vector<8x32xf32>
    %199 = arith.truncf %198 : vector<8x32xf32> to vector<8x32xbf16>
    %c1 = arith.constant 1 : index
    %c0_87 = arith.constant 0 : index
    %c0_88 = arith.constant 0 : index
    %200 = vector.load %arg6[%c1, %c0_87, %c0_88] : memref<2x32x96xbf16, #tpu.memory_space<vmem>>, vector<1x32x96xbf16>
    %201 = vector.shape_cast %200 : vector<1x32x96xbf16> to vector<32x96xbf16>
    %cst_89 = arith.constant dense<0.000000e+00> : vector<8x96xf32>
    %202 = tpu.matmul %199, %201, %cst_89 {dimension_numbers = #tpu.dot_dimension_numbers<[1], [0], [0], [1], [0, 0, 1, 1], [], []>} : vector<8x32xbf16>, vector<32x96xbf16>, vector<8x96xf32> -> vector<8x96xf32>
    %c1_90 = arith.constant 1 : index
    %c0_91 = arith.constant 0 : index
    %c0_92 = arith.constant 0 : index
    %203 = vector.load %arg7[%c1_90, %c0_91, %c0_92] : memref<2x1x96xf32, #tpu.memory_space<vmem>>, vector<1x1x96xf32>
    %204 = vector.shape_cast %203 : vector<1x1x96xf32> to vector<1x96xf32>
    %205 = vector.broadcast %204 : vector<1x96xf32> to vector<8x96xf32>
    %206 = arith.addf %202, %205 : vector<8x96xf32>
    %207 = arith.truncf %206 : vector<8x96xf32> to vector<8x96xbf16>
    %208 = vector.extract_strided_slice %207 {offsets = [0, 0], sizes = [8, 8], strides = [1, 1]} : vector<8x96xbf16> to vector<8x8xbf16>
    %209 = vector.extract_strided_slice %207 {offsets = [0, 32], sizes = [8, 8], strides = [1, 1]} : vector<8x96xbf16> to vector<8x8xbf16>
    %210 = vector.extract_strided_slice %207 {offsets = [0, 64], sizes = [8, 8], strides = [1, 1]} : vector<8x96xbf16> to vector<8x8xbf16>
    %cst_93 = arith.constant dense<0.000000e+00> : vector<8x8xf32>
    %211 = tpu.matmul %208, %209, %cst_93 {dimension_numbers = #tpu.dot_dimension_numbers<[1], [1], [0], [0], [0, 0, 1, 0], [], []>} : vector<8x8xbf16>, vector<8x8xbf16>, vector<8x8xf32> -> vector<8x8xf32>
    %cst_94 = arith.constant 0.353553385 : f32
    %212 = vector.broadcast %cst_94 : f32 to vector<8x8xf32>
    %213 = arith.mulf %211, %212 : vector<8x8xf32>
    %214 = vector.broadcast %1 : vector<1x8xf32> to vector<8x8xf32>
    %215 = arith.addf %213, %214 : vector<8x8xf32>
    %cst_95 = arith.constant dense<0xFF800000> : vector<8xf32>
    %216 = vector.multi_reduction <maximumf>, %215, %cst_95 [1] : vector<8x8xf32> to vector<8xf32>
    %217 = vector.shape_cast %216 : vector<8xf32> to vector<8x1xf32>
    %218 = vector.broadcast %217 : vector<8x1xf32> to vector<8x8xf32>
    %219 = arith.subf %215, %218 : vector<8x8xf32>
    %220 = math.exp %219 : vector<8x8xf32>
    %cst_96 = arith.constant dense<0.000000e+00> : vector<8xf32>
    %221 = vector.multi_reduction <add>, %220, %cst_96 [1] : vector<8x8xf32> to vector<8xf32>
    %222 = vector.shape_cast %221 : vector<8xf32> to vector<8x1xf32>
    %223 = vector.broadcast %222 : vector<8x1xf32> to vector<8x8xf32>
    %224 = arith.divf %220, %223 : vector<8x8xf32>
    %225 = arith.truncf %224 : vector<8x8xf32> to vector<8x8xbf16>
    %cst_97 = arith.constant dense<0.000000e+00> : vector<8x8xf32>
    %226 = tpu.matmul %225, %210, %cst_97 {dimension_numbers = #tpu.dot_dimension_numbers<[1], [0], [0], [1], [0, 0, 1, 1], [], []>} : vector<8x8xbf16>, vector<8x8xbf16>, vector<8x8xf32> -> vector<8x8xf32>
    %227 = vector.extract_strided_slice %207 {offsets = [0, 8], sizes = [8, 8], strides = [1, 1]} : vector<8x96xbf16> to vector<8x8xbf16>
    %228 = vector.extract_strided_slice %207 {offsets = [0, 40], sizes = [8, 8], strides = [1, 1]} : vector<8x96xbf16> to vector<8x8xbf16>
    %229 = vector.extract_strided_slice %207 {offsets = [0, 72], sizes = [8, 8], strides = [1, 1]} : vector<8x96xbf16> to vector<8x8xbf16>
    %cst_98 = arith.constant dense<0.000000e+00> : vector<8x8xf32>
    %230 = tpu.matmul %227, %228, %cst_98 {dimension_numbers = #tpu.dot_dimension_numbers<[1], [1], [0], [0], [0, 0, 1, 0], [], []>} : vector<8x8xbf16>, vector<8x8xbf16>, vector<8x8xf32> -> vector<8x8xf32>
    %cst_99 = arith.constant 0.353553385 : f32
    %231 = vector.broadcast %cst_99 : f32 to vector<8x8xf32>
    %232 = arith.mulf %230, %231 : vector<8x8xf32>
    %233 = vector.broadcast %1 : vector<1x8xf32> to vector<8x8xf32>
    %234 = arith.addf %232, %233 : vector<8x8xf32>
    %cst_100 = arith.constant dense<0xFF800000> : vector<8xf32>
    %235 = vector.multi_reduction <maximumf>, %234, %cst_100 [1] : vector<8x8xf32> to vector<8xf32>
    %236 = vector.shape_cast %235 : vector<8xf32> to vector<8x1xf32>
    %237 = vector.broadcast %236 : vector<8x1xf32> to vector<8x8xf32>
    %238 = arith.subf %234, %237 : vector<8x8xf32>
    %239 = math.exp %238 : vector<8x8xf32>
    %cst_101 = arith.constant dense<0.000000e+00> : vector<8xf32>
    %240 = vector.multi_reduction <add>, %239, %cst_101 [1] : vector<8x8xf32> to vector<8xf32>
    %241 = vector.shape_cast %240 : vector<8xf32> to vector<8x1xf32>
    %242 = vector.broadcast %241 : vector<8x1xf32> to vector<8x8xf32>
    %243 = arith.divf %239, %242 : vector<8x8xf32>
    %244 = arith.truncf %243 : vector<8x8xf32> to vector<8x8xbf16>
    %cst_102 = arith.constant dense<0.000000e+00> : vector<8x8xf32>
    %245 = tpu.matmul %244, %229, %cst_102 {dimension_numbers = #tpu.dot_dimension_numbers<[1], [0], [0], [1], [0, 0, 1, 1], [], []>} : vector<8x8xbf16>, vector<8x8xbf16>, vector<8x8xf32> -> vector<8x8xf32>
    %246 = vector.extract_strided_slice %207 {offsets = [0, 16], sizes = [8, 8], strides = [1, 1]} : vector<8x96xbf16> to vector<8x8xbf16>
    %247 = vector.extract_strided_slice %207 {offsets = [0, 48], sizes = [8, 8], strides = [1, 1]} : vector<8x96xbf16> to vector<8x8xbf16>
    %248 = vector.extract_strided_slice %207 {offsets = [0, 80], sizes = [8, 8], strides = [1, 1]} : vector<8x96xbf16> to vector<8x8xbf16>
    %cst_103 = arith.constant dense<0.000000e+00> : vector<8x8xf32>
    %249 = tpu.matmul %246, %247, %cst_103 {dimension_numbers = #tpu.dot_dimension_numbers<[1], [1], [0], [0], [0, 0, 1, 0], [], []>} : vector<8x8xbf16>, vector<8x8xbf16>, vector<8x8xf32> -> vector<8x8xf32>
    %cst_104 = arith.constant 0.353553385 : f32
    %250 = vector.broadcast %cst_104 : f32 to vector<8x8xf32>
    %251 = arith.mulf %249, %250 : vector<8x8xf32>
    %252 = vector.broadcast %1 : vector<1x8xf32> to vector<8x8xf32>
    %253 = arith.addf %251, %252 : vector<8x8xf32>
    %cst_105 = arith.constant dense<0xFF800000> : vector<8xf32>
    %254 = vector.multi_reduction <maximumf>, %253, %cst_105 [1] : vector<8x8xf32> to vector<8xf32>
    %255 = vector.shape_cast %254 : vector<8xf32> to vector<8x1xf32>
    %256 = vector.broadcast %255 : vector<8x1xf32> to vector<8x8xf32>
    %257 = arith.subf %253, %256 : vector<8x8xf32>
    %258 = math.exp %257 : vector<8x8xf32>
    %cst_106 = arith.constant dense<0.000000e+00> : vector<8xf32>
    %259 = vector.multi_reduction <add>, %258, %cst_106 [1] : vector<8x8xf32> to vector<8xf32>
    %260 = vector.shape_cast %259 : vector<8xf32> to vector<8x1xf32>
    %261 = vector.broadcast %260 : vector<8x1xf32> to vector<8x8xf32>
    %262 = arith.divf %258, %261 : vector<8x8xf32>
    %263 = arith.truncf %262 : vector<8x8xf32> to vector<8x8xbf16>
    %cst_107 = arith.constant dense<0.000000e+00> : vector<8x8xf32>
    %264 = tpu.matmul %263, %248, %cst_107 {dimension_numbers = #tpu.dot_dimension_numbers<[1], [0], [0], [1], [0, 0, 1, 1], [], []>} : vector<8x8xbf16>, vector<8x8xbf16>, vector<8x8xf32> -> vector<8x8xf32>
    %265 = vector.extract_strided_slice %207 {offsets = [0, 24], sizes = [8, 8], strides = [1, 1]} : vector<8x96xbf16> to vector<8x8xbf16>
    %266 = vector.extract_strided_slice %207 {offsets = [0, 56], sizes = [8, 8], strides = [1, 1]} : vector<8x96xbf16> to vector<8x8xbf16>
    %267 = vector.extract_strided_slice %207 {offsets = [0, 88], sizes = [8, 8], strides = [1, 1]} : vector<8x96xbf16> to vector<8x8xbf16>
    %cst_108 = arith.constant dense<0.000000e+00> : vector<8x8xf32>
    %268 = tpu.matmul %265, %266, %cst_108 {dimension_numbers = #tpu.dot_dimension_numbers<[1], [1], [0], [0], [0, 0, 1, 0], [], []>} : vector<8x8xbf16>, vector<8x8xbf16>, vector<8x8xf32> -> vector<8x8xf32>
    %cst_109 = arith.constant 0.353553385 : f32
    %269 = vector.broadcast %cst_109 : f32 to vector<8x8xf32>
    %270 = arith.mulf %268, %269 : vector<8x8xf32>
    %271 = vector.broadcast %1 : vector<1x8xf32> to vector<8x8xf32>
    %272 = arith.addf %270, %271 : vector<8x8xf32>
    %cst_110 = arith.constant dense<0xFF800000> : vector<8xf32>
    %273 = vector.multi_reduction <maximumf>, %272, %cst_110 [1] : vector<8x8xf32> to vector<8xf32>
    %274 = vector.shape_cast %273 : vector<8xf32> to vector<8x1xf32>
    %275 = vector.broadcast %274 : vector<8x1xf32> to vector<8x8xf32>
    %276 = arith.subf %272, %275 : vector<8x8xf32>
    %277 = math.exp %276 : vector<8x8xf32>
    %cst_111 = arith.constant dense<0.000000e+00> : vector<8xf32>
    %278 = vector.multi_reduction <add>, %277, %cst_111 [1] : vector<8x8xf32> to vector<8xf32>
    %279 = vector.shape_cast %278 : vector<8xf32> to vector<8x1xf32>
    %280 = vector.broadcast %279 : vector<8x1xf32> to vector<8x8xf32>
    %281 = arith.divf %277, %280 : vector<8x8xf32>
    %282 = arith.truncf %281 : vector<8x8xf32> to vector<8x8xbf16>
    %cst_112 = arith.constant dense<0.000000e+00> : vector<8x8xf32>
    %283 = tpu.matmul %282, %267, %cst_112 {dimension_numbers = #tpu.dot_dimension_numbers<[1], [0], [0], [1], [0, 0, 1, 1], [], []>} : vector<8x8xbf16>, vector<8x8xbf16>, vector<8x8xf32> -> vector<8x8xf32>
    %284 = tpu.concatenate %226, %245, %264, %283 in 1 : vector<8x8xf32>, vector<8x8xf32>, vector<8x8xf32>, vector<8x8xf32> -> vector<8x32xf32>
    %285 = arith.truncf %284 : vector<8x32xf32> to vector<8x32xbf16>
    %c1_113 = arith.constant 1 : index
    %c0_114 = arith.constant 0 : index
    %c0_115 = arith.constant 0 : index
    %286 = vector.load %arg8[%c1_113, %c0_114, %c0_115] : memref<2x32x32xbf16, #tpu.memory_space<vmem>>, vector<1x32x32xbf16>
    %287 = vector.shape_cast %286 : vector<1x32x32xbf16> to vector<32x32xbf16>
    %cst_116 = arith.constant dense<0.000000e+00> : vector<8x32xf32>
    %288 = tpu.matmul %285, %287, %cst_116 {dimension_numbers = #tpu.dot_dimension_numbers<[1], [0], [0], [1], [0, 0, 1, 1], [], []>} : vector<8x32xbf16>, vector<32x32xbf16>, vector<8x32xf32> -> vector<8x32xf32>
    %c1_117 = arith.constant 1 : index
    %c0_118 = arith.constant 0 : index
    %c0_119 = arith.constant 0 : index
    %289 = vector.load %arg9[%c1_117, %c0_118, %c0_119] : memref<2x1x32xf32, #tpu.memory_space<vmem>>, vector<1x1x32xf32>
    %290 = vector.shape_cast %289 : vector<1x1x32xf32> to vector<1x32xf32>
    %291 = vector.broadcast %290 : vector<1x32xf32> to vector<8x32xf32>
    %292 = arith.addf %288, %291 : vector<8x32xf32>
    %293 = arith.addf %292, %198 : vector<8x32xf32>
    %c1_120 = arith.constant 1 : index
    %c0_121 = arith.constant 0 : index
    %c0_122 = arith.constant 0 : index
    %294 = vector.load %arg10[%c1_120, %c0_121, %c0_122] : memref<2x1x32xf32, #tpu.memory_space<vmem>>, vector<1x1x32xf32>
    %295 = vector.shape_cast %294 : vector<1x1x32xf32> to vector<1x32xf32>
    %c1_123 = arith.constant 1 : index
    %c0_124 = arith.constant 0 : index
    %c0_125 = arith.constant 0 : index
    %296 = vector.load %arg11[%c1_123, %c0_124, %c0_125] : memref<2x1x32xf32, #tpu.memory_space<vmem>>, vector<1x1x32xf32>
    %297 = vector.shape_cast %296 : vector<1x1x32xf32> to vector<1x32xf32>
    %cst_126 = arith.constant dense<0.000000e+00> : vector<8xf32>
    %298 = vector.multi_reduction <add>, %293, %cst_126 [1] : vector<8x32xf32> to vector<8xf32>
    %299 = vector.shape_cast %298 : vector<8xf32> to vector<8x1xf32>
    %cst_127 = arith.constant 3.200000e+01 : f32
    %300 = vector.broadcast %cst_127 : f32 to vector<8x1xf32>
    %301 = arith.divf %299, %300 : vector<8x1xf32>
    %302 = vector.broadcast %301 : vector<8x1xf32> to vector<8x32xf32>
    %303 = arith.subf %293, %302 : vector<8x32xf32>
    %304 = arith.mulf %303, %303 : vector<8x32xf32>
    %cst_128 = arith.constant dense<0.000000e+00> : vector<8xf32>
    %305 = vector.multi_reduction <add>, %304, %cst_128 [1] : vector<8x32xf32> to vector<8xf32>
    %306 = vector.shape_cast %305 : vector<8xf32> to vector<8x1xf32>
    %cst_129 = arith.constant 3.200000e+01 : f32
    %307 = vector.broadcast %cst_129 : f32 to vector<8x1xf32>
    %308 = arith.divf %306, %307 : vector<8x1xf32>
    %cst_130 = arith.constant 9.99999996E-13 : f32
    %309 = vector.broadcast %cst_130 : f32 to vector<8x1xf32>
    %310 = arith.addf %308, %309 : vector<8x1xf32>
    %311 = math.rsqrt %310 : vector<8x1xf32>
    %312 = vector.broadcast %311 : vector<8x1xf32> to vector<8x32xf32>
    %313 = arith.mulf %303, %312 : vector<8x32xf32>
    %314 = vector.broadcast %295 : vector<1x32xf32> to vector<8x32xf32>
    %315 = arith.mulf %313, %314 : vector<8x32xf32>
    %316 = vector.broadcast %297 : vector<1x32xf32> to vector<8x32xf32>
    %317 = arith.addf %315, %316 : vector<8x32xf32>
    %318 = arith.truncf %317 : vector<8x32xf32> to vector<8x32xbf16>
    %c1_131 = arith.constant 1 : index
    %c0_132 = arith.constant 0 : index
    %c0_133 = arith.constant 0 : index
    %319 = vector.load %arg12[%c1_131, %c0_132, %c0_133] : memref<2x32x64xbf16, #tpu.memory_space<vmem>>, vector<1x32x64xbf16>
    %320 = vector.shape_cast %319 : vector<1x32x64xbf16> to vector<32x64xbf16>
    %cst_134 = arith.constant dense<0.000000e+00> : vector<8x64xf32>
    %321 = tpu.matmul %318, %320, %cst_134 {dimension_numbers = #tpu.dot_dimension_numbers<[1], [0], [0], [1], [0, 0, 1, 1], [], []>} : vector<8x32xbf16>, vector<32x64xbf16>, vector<8x64xf32> -> vector<8x64xf32>
    %c1_135 = arith.constant 1 : index
    %c0_136 = arith.constant 0 : index
    %c0_137 = arith.constant 0 : index
    %322 = vector.load %arg13[%c1_135, %c0_136, %c0_137] : memref<2x1x64xf32, #tpu.memory_space<vmem>>, vector<1x1x64xf32>
    %323 = vector.shape_cast %322 : vector<1x1x64xf32> to vector<1x64xf32>
    %324 = vector.broadcast %323 : vector<1x64xf32> to vector<8x64xf32>
    %325 = arith.addf %321, %324 : vector<8x64xf32>
    %cst_138 = arith.constant 5.000000e-01 : f32
    %326 = vector.broadcast %cst_138 : f32 to vector<8x64xf32>
    %327 = arith.mulf %326, %325 : vector<8x64xf32>
    %cst_139 = arith.constant 4.471500e-02 : f32
    %328 = vector.broadcast %cst_139 : f32 to vector<8x64xf32>
    %329 = arith.mulf %328, %325 : vector<8x64xf32>
    %330 = arith.mulf %329, %325 : vector<8x64xf32>
    %331 = arith.mulf %330, %325 : vector<8x64xf32>
    %332 = arith.addf %325, %331 : vector<8x64xf32>
    %cst_140 = arith.constant 0.797884583 : f32
    %333 = vector.broadcast %cst_140 : f32 to vector<8x64xf32>
    %334 = arith.mulf %333, %332 : vector<8x64xf32>
    %335 = math.tanh %334 : vector<8x64xf32>
    %cst_141 = arith.constant 1.000000e+00 : f32
    %336 = vector.broadcast %cst_141 : f32 to vector<8x64xf32>
    %337 = arith.addf %336, %335 : vector<8x64xf32>
    %338 = arith.mulf %327, %337 : vector<8x64xf32>
    %339 = arith.truncf %338 : vector<8x64xf32> to vector<8x64xbf16>
    %c1_142 = arith.constant 1 : index
    %c0_143 = arith.constant 0 : index
    %c0_144 = arith.constant 0 : index
    %340 = vector.load %arg14[%c1_142, %c0_143, %c0_144] : memref<2x64x32xbf16, #tpu.memory_space<vmem>>, vector<1x64x32xbf16>
    %341 = vector.shape_cast %340 : vector<1x64x32xbf16> to vector<64x32xbf16>
    %cst_145 = arith.constant dense<0.000000e+00> : vector<8x32xf32>
    %342 = tpu.matmul %339, %341, %cst_145 {dimension_numbers = #tpu.dot_dimension_numbers<[1], [0], [0], [1], [0, 0, 1, 1], [], []>} : vector<8x64xbf16>, vector<64x32xbf16>, vector<8x32xf32> -> vector<8x32xf32>
    %c1_146 = arith.constant 1 : index
    %c0_147 = arith.constant 0 : index
    %c0_148 = arith.constant 0 : index
    %343 = vector.load %arg15[%c1_146, %c0_147, %c0_148] : memref<2x1x32xf32, #tpu.memory_space<vmem>>, vector<1x1x32xf32>
    %344 = vector.shape_cast %343 : vector<1x1x32xf32> to vector<1x32xf32>
    %345 = vector.broadcast %344 : vector<1x32xf32> to vector<8x32xf32>
    %346 = arith.addf %342, %345 : vector<8x32xf32>
    %347 = arith.addf %346, %317 : vector<8x32xf32>
    %c1_149 = arith.constant 1 : index
    %c0_150 = arith.constant 0 : index
    %c0_151 = arith.constant 0 : index
    %348 = vector.load %arg16[%c1_149, %c0_150, %c0_151] : memref<2x1x32xf32, #tpu.memory_space<vmem>>, vector<1x1x32xf32>
    %349 = vector.shape_cast %348 : vector<1x1x32xf32> to vector<1x32xf32>
    %c1_152 = arith.constant 1 : index
    %c0_153 = arith.constant 0 : index
    %c0_154 = arith.constant 0 : index
    %350 = vector.load %arg17[%c1_152, %c0_153, %c0_154] : memref<2x1x32xf32, #tpu.memory_space<vmem>>, vector<1x1x32xf32>
    %351 = vector.shape_cast %350 : vector<1x1x32xf32> to vector<1x32xf32>
    %cst_155 = arith.constant dense<0.000000e+00> : vector<8xf32>
    %352 = vector.multi_reduction <add>, %347, %cst_155 [1] : vector<8x32xf32> to vector<8xf32>
    %353 = vector.shape_cast %352 : vector<8xf32> to vector<8x1xf32>
    %cst_156 = arith.constant 3.200000e+01 : f32
    %354 = vector.broadcast %cst_156 : f32 to vector<8x1xf32>
    %355 = arith.divf %353, %354 : vector<8x1xf32>
    %356 = vector.broadcast %355 : vector<8x1xf32> to vector<8x32xf32>
    %357 = arith.subf %347, %356 : vector<8x32xf32>
    %358 = arith.mulf %357, %357 : vector<8x32xf32>
    %cst_157 = arith.constant dense<0.000000e+00> : vector<8xf32>
    %359 = vector.multi_reduction <add>, %358, %cst_157 [1] : vector<8x32xf32> to vector<8xf32>
    %360 = vector.shape_cast %359 : vector<8xf32> to vector<8x1xf32>
    %cst_158 = arith.constant 3.200000e+01 : f32
    %361 = vector.broadcast %cst_158 : f32 to vector<8x1xf32>
    %362 = arith.divf %360, %361 : vector<8x1xf32>
    %cst_159 = arith.constant 9.99999996E-13 : f32
    %363 = vector.broadcast %cst_159 : f32 to vector<8x1xf32>
    %364 = arith.addf %362, %363 : vector<8x1xf32>
    %365 = math.rsqrt %364 : vector<8x1xf32>
    %366 = vector.broadcast %365 : vector<8x1xf32> to vector<8x32xf32>
    %367 = arith.mulf %357, %366 : vector<8x32xf32>
    %368 = vector.broadcast %349 : vector<1x32xf32> to vector<8x32xf32>
    %369 = arith.mulf %367, %368 : vector<8x32xf32>
    %370 = vector.broadcast %351 : vector<1x32xf32> to vector<8x32xf32>
    %371 = arith.addf %369, %370 : vector<8x32xf32>
    %c0_160 = arith.constant 0 : index
    %c0_161 = arith.constant 0 : index
    %372 = vector.load %arg19[%c0_160, %c0_161] : memref<8x32xf32, #tpu.memory_space<vmem>>, vector<8x32xf32>
    tpu.vector_store %arg19[%c0_160, %c0_161], %371 {strides = array<i32>} : memref<8x32xf32, #tpu.memory_space<vmem>>, vector<8x32xf32>,
    %373 = arith.index_cast %arg0 : i32 to index
    %374 = memref.load %arg1[%373] : memref<2xi32, #tpu.memory_space<smem>>
    %c0_i32 = arith.constant 0 : i32
    %375 = arith.maxsi %374, %c0_i32 : i32
    %c7_i32 = arith.constant 7 : i32
    %376 = arith.minsi %375, %c7_i32 : i32
    %377 = arith.index_cast %376 : i32 to index
    %c0_162 = arith.constant 0 : index
    %378 = vector.load %arg19[%377, %c0_162] : memref<8x32xf32, #tpu.memory_space<vmem>>, vector<1x32xf32>
    %379 = arith.mulf %378, %378 : vector<1x32xf32>
    %cst_163 = arith.constant dense<0.000000e+00> : vector<1xf32>
    %380 = vector.multi_reduction <add>, %379, %cst_163 [1] : vector<1x32xf32> to vector<1xf32>
    %381 = vector.shape_cast %380 : vector<1xf32> to vector<1x1xf32>
    %382 = math.sqrt %381 : vector<1x1xf32>
    %cst_164 = arith.constant 9.99999996E-13 : f32
    %383 = vector.broadcast %cst_164 : f32 to vector<1x1xf32>
    %384 = arith.maximumf %382, %383 : vector<1x1xf32>
    %385 = vector.broadcast %384 : vector<1x1xf32> to vector<1x32xf32>
    %386 = arith.divf %378, %385 : vector<1x32xf32>
    %cst_165 = arith.constant 0.000000e+00 : f32
    %387 = vector.broadcast %cst_165 : f32 to vector<1x96xf32>
    %388 = tpu.concatenate %386, %387 in 1 : vector<1x32xf32>, vector<1x96xf32> -> vector<1x128xf32>
    %c0_166 = arith.constant 0 : index
    %c0_167 = arith.constant 0 : index
    %c0_168 = arith.constant 0 : index
    %389 = vector.load %arg18[%c0_166, %c0_167, %c0_168] : memref<1x1x128xf32, #tpu.memory_space<vmem>>, vector<1x1x128xf32>
    %390 = vector.shape_cast %389 : vector<1x1x128xf32> to vector<1x128xf32>
    %391 = vector.shape_cast %388 : vector<1x128xf32> to vector<1x1x128xf32>
    tpu.vector_store %arg18[%c0_166, %c0_167, %c0_168], %391 {strides = array<i32>} : memref<1x1x128xf32, #tpu.memory_space<vmem>>, vector<1x1x128xf32>,
    return
  }
  func.func @transform_0(%arg0: i32, %arg1: memref<2xi32, #tpu.memory_space<smem>>) -> (i32, i32, i32) {
    %c0_i32 = arith.constant 0 : i32
    %c0_i32_0 = arith.constant 0 : i32
    %c0_i32_1 = arith.constant 0 : i32
    return %arg0, %c0_i32, %c0_i32_0 : i32, i32, i32
  }
  func.func @transform_1(%arg0: i32, %arg1: memref<2xi32, #tpu.memory_space<smem>>) -> (i32, i32, i32) {
    %c0_i32 = arith.constant 0 : i32
    %c0_i32_0 = arith.constant 0 : i32
    %c0_i32_1 = arith.constant 0 : i32
    return %arg0, %c0_i32, %c0_i32_0 : i32, i32, i32
  }
  func.func @transform_2(%arg0: i32, %arg1: memref<2xi32, #tpu.memory_space<smem>>) -> (i32, i32) {
    %c0_i32 = arith.constant 0 : i32
    %c0_i32_0 = arith.constant 0 : i32
    %c0_i32_1 = arith.constant 0 : i32
    return %c0_i32, %c0_i32_0 : i32, i32
  }
  func.func @transform_3(%arg0: i32, %arg1: memref<2xi32, #tpu.memory_space<smem>>) -> (i32, i32) {
    %c0_i32 = arith.constant 0 : i32
    %c0_i32_0 = arith.constant 0 : i32
    %c0_i32_1 = arith.constant 0 : i32
    return %c0_i32, %c0_i32_0 : i32, i32
  }
  func.func @transform_4(%arg0: i32, %arg1: memref<2xi32, #tpu.memory_space<smem>>) -> (i32, i32, i32) {
    %c0_i32 = arith.constant 0 : i32
    %c0_i32_0 = arith.constant 0 : i32
    %c0_i32_1 = arith.constant 0 : i32
    %c0_i32_2 = arith.constant 0 : i32
    return %c0_i32, %c0_i32_0, %c0_i32_1 : i32, i32, i32
  }
  func.func @transform_5(%arg0: i32, %arg1: memref<2xi32, #tpu.memory_space<smem>>) -> (i32, i32, i32) {
    %c0_i32 = arith.constant 0 : i32
    %c0_i32_0 = arith.constant 0 : i32
    %c0_i32_1 = arith.constant 0 : i32
    %c0_i32_2 = arith.constant 0 : i32
    return %c0_i32, %c0_i32_0, %c0_i32_1 : i32, i32, i32
  }
  func.func @transform_6(%arg0: i32, %arg1: memref<2xi32, #tpu.memory_space<smem>>) -> (i32, i32, i32) {
    %c0_i32 = arith.constant 0 : i32
    %c0_i32_0 = arith.constant 0 : i32
    %c0_i32_1 = arith.constant 0 : i32
    %c0_i32_2 = arith.constant 0 : i32
    return %c0_i32, %c0_i32_0, %c0_i32_1 : i32, i32, i32
  }
  func.func @transform_7(%arg0: i32, %arg1: memref<2xi32, #tpu.memory_space<smem>>) -> (i32, i32, i32) {
    %c0_i32 = arith.constant 0 : i32
    %c0_i32_0 = arith.constant 0 : i32
    %c0_i32_1 = arith.constant 0 : i32
    %c0_i32_2 = arith.constant 0 : i32
    return %c0_i32, %c0_i32_0, %c0_i32_1 : i32, i32, i32
  }
  func.func @transform_8(%arg0: i32, %arg1: memref<2xi32, #tpu.memory_space<smem>>) -> (i32, i32, i32) {
    %c0_i32 = arith.constant 0 : i32
    %c0_i32_0 = arith.constant 0 : i32
    %c0_i32_1 = arith.constant 0 : i32
    %c0_i32_2 = arith.constant 0 : i32
    return %c0_i32, %c0_i32_0, %c0_i32_1 : i32, i32, i32
  }
  func.func @transform_9(%arg0: i32, %arg1: memref<2xi32, #tpu.memory_space<smem>>) -> (i32, i32, i32) {
    %c0_i32 = arith.constant 0 : i32
    %c0_i32_0 = arith.constant 0 : i32
    %c0_i32_1 = arith.constant 0 : i32
    %c0_i32_2 = arith.constant 0 : i32
    return %c0_i32, %c0_i32_0, %c0_i32_1 : i32, i32, i32
  }
  func.func @transform_10(%arg0: i32, %arg1: memref<2xi32, #tpu.memory_space<smem>>) -> (i32, i32, i32) {
    %c0_i32 = arith.constant 0 : i32
    %c0_i32_0 = arith.constant 0 : i32
    %c0_i32_1 = arith.constant 0 : i32
    %c0_i32_2 = arith.constant 0 : i32
    return %c0_i32, %c0_i32_0, %c0_i32_1 : i32, i32, i32
  }
  func.func @transform_11(%arg0: i32, %arg1: memref<2xi32, #tpu.memory_space<smem>>) -> (i32, i32, i32) {
    %c0_i32 = arith.constant 0 : i32
    %c0_i32_0 = arith.constant 0 : i32
    %c0_i32_1 = arith.constant 0 : i32
    %c0_i32_2 = arith.constant 0 : i32
    return %c0_i32, %c0_i32_0, %c0_i32_1 : i32, i32, i32
  }
  func.func @transform_12(%arg0: i32, %arg1: memref<2xi32, #tpu.memory_space<smem>>) -> (i32, i32, i32) {
    %c0_i32 = arith.constant 0 : i32
    %c0_i32_0 = arith.constant 0 : i32
    %c0_i32_1 = arith.constant 0 : i32
    %c0_i32_2 = arith.constant 0 : i32
    return %c0_i32, %c0_i32_0, %c0_i32_1 : i32, i32, i32
  }
  func.func @transform_13(%arg0: i32, %arg1: memref<2xi32, #tpu.memory_space<smem>>) -> (i32, i32, i32) {
    %c0_i32 = arith.constant 0 : i32
    %c0_i32_0 = arith.constant 0 : i32
    %c0_i32_1 = arith.constant 0 : i32
    %c0_i32_2 = arith.constant 0 : i32
    return %c0_i32, %c0_i32_0, %c0_i32_1 : i32, i32, i32
  }
  func.func @transform_14(%arg0: i32, %arg1: memref<2xi32, #tpu.memory_space<smem>>) -> (i32, i32, i32) {
    %c0_i32 = arith.constant 0 : i32
    %c0_i32_0 = arith.constant 0 : i32
    %c0_i32_1 = arith.constant 0 : i32
    %c0_i32_2 = arith.constant 0 : i32
    return %c0_i32, %c0_i32_0, %c0_i32_1 : i32, i32, i32
  }
  func.func @transform_15(%arg0: i32, %arg1: memref<2xi32, #tpu.memory_space<smem>>) -> (i32, i32, i32) {
    %c0_i32 = arith.constant 0 : i32
    %c0_i32_0 = arith.constant 0 : i32
    %c0_i32_1 = arith.constant 0 : i32
    %c0_i32_2 = arith.constant 0 : i32
    return %c0_i32, %c0_i32_0, %c0_i32_1 : i32, i32, i32
  }
  func.func @transform_16(%arg0: i32, %arg1: memref<2xi32, #tpu.memory_space<smem>>) -> (i32, i32, i32) {
    %c0_i32 = arith.constant 0 : i32
    %c0_i32_0 = arith.constant 0 : i32
    %c0_i32_1 = arith.constant 0 : i32
    return %arg0, %c0_i32, %c0_i32_0 : i32, i32, i32
  }
}

</mosaic_0001>

<bundles_post_ra>
// kernel: tpu_custom_call.1
= control target key start
LH: loop header
LB: loop body
LE: loop exit
PB: predicated region body
PF: predicated region fallthrough
CT: control target
= control target key end

     0   :  { %s3680_s0 = inlined_call_operand.hbm [shape: s32[2], index: 0, kind: input, shape index: {}]   ;;  %s3681_s1 = inlined_call_operand.vmem [shape: f32[2,1,8], index: 1, kind: input, shape index: {}]   ;;  %s3682_s2 = inlined_call_operand.hbm [shape: f32[2,8,32], index: 2, kind: input, shape index: {}]   ;;  %s3683_s3 = inlined_call_operand.vmem [shape: f32[1,32], index: 3, kind: input, shape index: {}]   ;;  %s3684_s4 = inlined_call_operand.hbm [shape: f32[1,32], index: 4, kind: input, shape index: {}]   ;;  %s3685_s5 = inlined_call_operand.vmem [shape: bf16[2,32,96], index: 5, kind: input, shape index: {}]   ;;  %s3686_s6 = inlined_call_operand.vmem [shape: f32[2,1,96], index: 6, kind: input, shape index: {}]   ;;  %s3687_s7 = inlined_call_operand.vmem [shape: bf16[2,32,32], index: 7, kind: input, shape index: {}]   ;;  %s3688_s8 = inlined_call_operand.vmem [shape: f32[2,1,32], index: 8, kind: input, shape index: {}]   ;;  %s3689_s9 = inlined_call_operand.vmem [shape: f32[2,1,32], index: 9, kind: input, shape index: {}]   ;;  %s3690_s10 = inlined_call_operand.vmem [shape: f32[2,1,32], index: 10, kind: input, shape index: {}]   ;;  %s3691_s11 = inlined_call_operand.vmem [shape: bf16[2,32,64], index: 11, kind: input, shape index: {}]   ;;  %s3692_s12 = inlined_call_operand.vmem [shape: f32[2,1,64], index: 12, kind: input, shape index: {}]   ;;  %s3693_s13 = inlined_call_operand.vmem [shape: bf16[2,64,32], index: 13, kind: input, shape index: {}]   ;;  %s3694_s14 = inlined_call_operand.vmem [shape: f32[2,1,32], index: 14, kind: input, shape index: {}]   ;;  %s3695_s15 = inlined_call_operand.vmem [shape: f32[2,1,32], index: 15, kind: input, shape index: {}]   ;;  %s3696_s16 = inlined_call_operand.vmem [shape: f32[2,1,32], index: 16, kind: input, shape index: {}]   ;;  %s3697_s17 = inlined_call_operand.hbm [shape: f32[2,1,128], index: 17, kind: output, shape index: {}]  }
   0x1   :  { %3720 = sst [smem:[#allocation18_spill]] %s3680_s0 }
   0x2   :  { %3721 = sst [smem:[#allocation19_spill]] %s3681_s1  ;;  %s3726_s26 = sld [smem:[#allocation18_spill]] }
   0x3   :  { %3722 = sst [smem:[#allocation20_spill]] %s3684_s4 }
   0x4   :  { %3723 = sst [smem:[#allocation21_spill]] %s3690_s10 }
   0x5   :  { %3724 = sst [smem:[#allocation22_spill]] %s3696_s16 }
   0x6   :  { %3725 = sst [smem:[#allocation23_spill]] %s3697_s17 }
   0x8   :  { %s2863_s10 = scalar_lea.hbm %s3726_s26, 16 }
   0x9   :  { %p2864_p0 = scmp.ne.s32.totalorder %s3726_s26, %s2863_s10  ;;  %p2867_p1 = scmp.lt.u32.totalorder %s2863_s10, %s3726_s26 }
   0xb   :  { %p2869_p2 = pnand %p2867_p1, %p2864_p0 }
   0xd   :  { %2872 = shalt.err (!%p2869_p2)  }
   0xe   :  { %s3005_s30 = smov [#allocation4]  }
   0xf   :  { %23 = dma.hbm_to_smem %s3726_s26, 16, %s3005_s30, [#allocation3] }
  0x10   :  { %2975 = dma.done.wait [#allocation3], 16 }
  0x11   :  { %2976 = vsyncadd [#allocation3], 4294967280 }
  0x12   :  { %25 = sfence }
  0x13   :  { %26 = vsyncpa [#allocation6], 0 }
  0x14   :  { %28 = vsyncpa [#allocation6 + $0x1], 0 }
  0x15   :  { %29 = vsyncpa [#allocation9], 0 }
  0x16   :  { %30 = vsyncpa [#allocation7], 0 }
  0x17   :  { %32 = vsyncpa [#allocation7 + $0x1], 0  ;;  %s3127_s1 = smov 0   ;;  %s3129_s20 = smov 0  }
  0x18   :  { %s3131_s10 = smov 0   ;;  %s3133_s21 = smov 0  }
  0x19 LB: > { %3727 = sst [smem:[#allocation15_spill]] %s2991_s1  ;;  %s3148_s22 = sadd.s32 4294967295, %s3003_s21   ;;  %s3003_s21 = sphi %s3133_s21, %s3765_s21   ;;  %s2999_s10 = sphi %s3131_s10, %s3768_s10   ;;  %s2995_s20 = sphi %s3129_s20, %s3767_s20   ;;  %s2991_s1 = sphi %s3127_s1, %s3766_s1  }
  0x1a   : > { %s2381_s23 = sadd.s32 4294967294, %s3003_s21   ;;  %p84_p3 = scmp.ne.s32.totalorder %s2995_s20, %s2991_s1 }
  0x1b   : > { %p3706_p4 = scmp.eq.s32.totalorder %s3148_s22, 0  ;;  %p408_p6 = scmp.eq.s32.totalorder %s2381_s23, 1 }
  0x1c   : > { %p2382_p8 = scmp.ge.s32.totalorder %s3003_s21, 1  ;;  %p415_p10 = scmp.lt.s32.totalorder %s3003_s21, 3 }
  0x1d   : > { %p3157_p7 = por %p3706_p4, %p84_p3  ;;  %p3162_p9 = por %p408_p6, %p84_p3 }
  0x1e   : > { %p3167_p11 = pnand %p2382_p8, %p415_p10  ;;  %s3006_s27 = smov [#allocation8]  }
  0x1f   : > { %s3728_s24 = scalar_select %p3157_p7, 1, 0 }
  0x20   : > { %s3729_s25 = scalar_select %p3162_p9, 1, 0 }
  0x21   : > { %s3731_s26 = scalar_select %p3167_p11, 1, 0 }
  0x22   : > { %3730 = sst [smem:[#allocation16_spill]] %s3729_s25  ;;  %s431_s28 = sshll.u32 %s3006_s27, 4  ;;  %s432_s28 = int_to_ptr.vmem [resolvable:$true] %s431_s28 }
  0x23   : > { %p2727_p13 = pneg %p3167_p11  ;;  %s3175_s29 = sadd.s32 1, %s3003_s21  }
  0x24   : > { %3732 = sst [smem:[#allocation17_spill]] %s3175_s29  ;;  %s68_s30 = ssub.s32 %s3003_s21, %s3175_s29 }
  0x25   : > { %p3179_p0 = pnand %p2727_p13, %p3706_p4  ;;  %p3185_p1 = scmp.eq.s32.totalorder %s68_s30, 0 }
  0x26   : > { %s71_s19 = sadd.s32 1, %s2999_s10  ;;  %s3735_s4 = sld [smem:[#allocation20_spill]] }
  0x27   : > { %s3734_s18 = scalar_select %p3185_p1, 1, 0 }
  0x28   : > { %p2875_p6 = pneg %p3179_p0 }
  0x2c   : > { %s2873_s25 = scalar_lea.hbm %s3735_s4, 16 }
  0x2d   : > { %p2874_p3 = scmp.ne.s32.totalorder %s3735_s4, %s2873_s25  ;;  %p2880_p13 = scmp.lt.u32.totalorder %s2873_s25, %s3735_s4 }
  0x2f   : > { %p2876_p8 = pnand %p2875_p6, %p2874_p3 }
  0x31   : > { %p2877_p10 = pneg %p2876_p8 }
  0x33   : > { %p2882_p12 = pnand %p2880_p13, %p2877_p10 }
  0x35   : > { %2885 = shalt.err (!%p2882_p12)
}
  0x36   : > { %s2886_s30 = scalar_lea.vmem %s432_s28, 16  ;;  %s2893_s23 = scalar_lea.vmem %s432_s28, 32 }
  0x37   : > { %p2887_p4 = scmp.ne.s32.totalorder %s432_s28, %s2886_s30  ;;  %p2894_p9 = scmp.lt.s32.totalorder %s432_s28, %s432_s28 }
  0x38   : > { %p2895_p7 = scmp.lt.s32.totalorder %s2893_s23, %s2886_s30 }
  0x39   : > { %p2889_p5 = pnand %p2887_p4, %p2875_p6 }
  0x3a   : > { %p2896_p11 = por %p2895_p7, %p2894_p9 }
  0x3b   : > { %p2890_p2 = pneg %p2889_p5 }
  0x3d   : > { %p2897_p1 = pnand %p2896_p11, %p2890_p2 }
  0x3f   : > { %2900 = shalt.err (!%p2897_p1)
}
  0x40   : > { %2730 = dma.hbm_to_vmem [thread:$0]  (!%p3179_p0), %s3735_s4, 16, %s432_s28, [#allocation9]  }
  0x41   : > { %p3736_p4 = scmp.ne.s32.totalorder %s3734_s18, 0  ;;  %p79_p5 = scmp.eq.s32.totalorder %s3003_s21, 0 }
  0x42   : > { %p3737_p7 = scmp.ne.s32.totalorder %s2999_s10, %s2995_s20  ;;  %p3738_p9 = scmp.eq.s32.totalorder %s3148_s22, 1 }
  0x43   : > { %s3211_s16 = scalar_select %p3736_p4, %s2999_s10, %s71_s19  }
  0x44   : > { %p3219_p11 = por %p3738_p9, %p3737_p7  ;;  %p2740_p12 = scmp.lt.s32.totalorder %s3003_s21, 2 }
  0x45   : > { %s484_s29 = sand.u32 1, %s2999_s10   ;;  %p3740_p1 = pmov %p3737_p7 }
  0x46   : > { %s2385_s0 = sshll.u32 %s484_s29, 3  ;;  %s2386_s27 = sshll.u32 %s3003_s21, 7 }
  0x47   : > { %p80_p2 = por %p79_p5, %p3740_p1  ;;  %s3232_s28 = scalar_lea.hbm %s3682_s2, %s2386_s27 }
  0x48   : > { %s488_s18 = scalar_lea.vmem [#allocation5], %s2385_s0  ;;  %s485_s1 = scalar_lea.sflag [#allocation6], %s484_s29 }
  0x49   : > { %s495_s19 = sshll.u32 %s488_s18, 4  ;;  %p3234_p0 = pnand %p2740_p12, %p80_p2  ;;  %s3238_s19 = int_to_ptr.vmem [resolvable:$true] %s495_s19 }
  0x4a   : > { %s2901_s4 = scalar_lea.hbm %s3232_s28, 128  ;;  %s2906_s30 = scalar_lea.hbm %s3682_s2, 256 }
  0x4b   : > { %p2902_p3 = scmp.ne.s32.totalorder %s3232_s28, %s2901_s4  ;;  %p2903_p6 = pneg %p3234_p0 }
  0x4c   : > { %p2907_p13 = scmp.lt.u32.totalorder %s3232_s28, %s3682_s2  ;;  %p2908_p4 = scmp.lt.u32.totalorder %s2906_s30, %s2901_s4 }
  0x4d   : > { %p2904_p8 = pnand %p2903_p6, %p2902_p3  ;;  %p2910_p7 = scmp.lt.u32.totalorder %s2901_s4, %s3232_s28 }
  0x4e   : > { %p2909_p5 = por %p2908_p4, %p2907_p13 }
  0x4f   : > { %p2905_p10 = pneg %p2904_p8 }
  0x50   : > { %p2911_p9 = por %p2910_p7, %p2909_p5 }
  0x52   : > { %p2912_p12 = pnand %p2911_p9, %p2905_p10 }
  0x54   : > { %2915 = shalt.err (!%p2912_p12)
}
  0x55   : > { %s2916_s29 = scalar_lea.vmem %s3238_s19, 128  ;;  %s3007_s27 = smov [#allocation5]  }
  0x56   : > { %p2917_p1 = scmp.ne.s32.totalorder %s3238_s19, %s2916_s29  ;;  %s2921_s0 = sshll.u32 %s3007_s27, 4  ;;  %s2922_s0 = int_to_ptr.vmem [resolvable:$false] %s2921_s0 }
  0x57   : > { %s2923_s23 = scalar_lea.vmem %s2922_s0, 256  ;;  %p2924_p8 = scmp.lt.s32.totalorder %s3238_s19, %s2922_s0 }
  0x58   : > { %p2919_p2 = pnand %p2917_p1, %p2903_p6  ;;  %p2925_p13 = scmp.lt.s32.totalorder %s2923_s23, %s2916_s29 }
  0x5a   : > { %p2920_p3 = pneg %p2919_p2  ;;  %p2926_p4 = por %p2925_p13, %p2924_p8 }
  0x5c   : > { %p2927_p5 = pnand %p2926_p4, %p2920_p3 }
  0x5e   : > { %2930 = shalt.err (!%p2927_p5)
}
  0x5f   : > { %2734 = dma.hbm_to_vmem [thread:$0]  (!%p3234_p0), %s3232_s28, 128, %s3238_s19, %s485_s1  }
  0x60   : > { %p3742_p10 = scmp.ne.s32.totalorder %s3731_s26, 0 }
  0x61   : > { %s3268_s4 = sand.u32 (!%p3742_p10), 1, %s2995_s20   ;;  %p3743_p6 = scmp.ne.s32.totalorder (!%p3742_p10), %s3728_s24, 0 }
  0x62   : > { %504 = sbr.rel (%p3742_p10) target bundleno = 5751 (0x1677), region = 84  ;;  %s2388_s30 = sshll.u32 (!%p3742_p10), %s3268_s4, 3 }
  0x63   : > { %s507_s18 = scalar_lea.sflag (!%p3742_p10), [#allocation6], %s3268_s4  ;;  %s510_s29 = scalar_lea.vmem (!%p3742_p10), [#allocation5], %s2388_s30 }
  0x69   : > { %2978 = dma.done.wait (%p3743_p6), %s507_s18, 128  }
  0x6a   : > { %2980 = vsyncadd (%p3743_p6), %s507_s18, 4294967168  ;;  %p3744_p7 = scmp.eq.s32.totalorder %s3148_s22, 0 }
  0x6c   : > { %2982 = dma.done.wait (%p3744_p7), [#allocation9], 16   ;;  %p3745_p0 = pmov %p3744_p7 }
  0x6d   : > { %vm573_vm0 = vcmask 261120   ;;  %v570_v0 = vld [vmem:[%s510_s29] sm:$0xff]  ;;  %v2793_v7 = vld [vmem:[%s3685_s5] sm:$0xff]   ;;  %v3008_v8 = vmov 0.0   ;;  %vm3009_vm1 = vmmov 0   ;;  %s3010_s23 = smov 120  }
  0x6e   : > { %2984 = vsyncadd (%p3745_p0), [#allocation9], 4294967280  ;;  %v574_v1 = vsel %vm573_vm0, %v570_v0, 0.0  ;;  %2551 = vmatprep.subr.bf16.mxu1 %v3008_v8  ;;  %2565 = vmatprep.subr.bf16.mxu0 %v3008_v8  ;;  %v2794_v9 = vld [vmem:[%s3685_s5 + $0x8] sm:$0xff]   ;;  %v2390_v14 = vld [vmem:[%s3683_s3] ss:$0 sm:$0xff] }
  0x6f   : > { %575 = vadd.xlane.f32.xlu0 %v574_v1  ;;  %2552 = vmatpush3.bf16.msra.mxu1 %v2793_v7  ;;  %v2391_v16 = vld [vmem:[#allocation8] ss:$0 sm:$0xff]  ;;  %v2392_v20 = vld [vmem:[%s3686_s6] ss:$0 sm:$0xff]  ;;  %s3011_s30 = smov 96   ;;  %s3012_s18 = smov 88  }
  0x70   : > { %2555 = vmatprep.mubr.msk.bf16.mxu1 %vm3009_vm1, %v3008_v8  ;;  %2553 = vmatprep.subr.bf16.mxu1 %v3008_v8  ;;  %s3719_s29 = smov 80   ;;  %s3718_s24 = smov 112   ;;  %vm673_vm2 = vcmask 64512   ;;  %vm745_vm3 = vcmask 1043456   ;;  %vm1138_vm4 = vcmask 130048   ;;  %vm1140_vm5 = vcmask 195584  }
  0x71   : > { %2567 = vmatprep.mubr.msk.bf16.mxu0 %vm3009_vm1, %v3008_v8  ;;  %s3717_s26 = smov 72   ;;  %s3713_s28 = smov 104   ;;  %vm1355_vm6 = vcmask 523264   ;;  %vm2266_vm7 = vcmask 253952  }
  0x72   : > { %p565_p9 = scmp.lt.s32.totalorder %s3148_s22, 1  ;;  %s3746_s27 = sld [smem:[#allocation19_spill]] }
  0x73   : > { %2554 = vmatpush3.bf16.msra.mxu1 %v2794_v9  ;;  %s3711_s17 = smov 56   ;;  %s3710_s1 = smov 48  }
  0x74   : > { %2559 = vmatprep.subr.bf16.mxu1 %v3008_v8  ;;  %s566_s19 = scalar_select %p565_p9, %s3148_s22, 1 }
  0x78   : > { %s567_s0 = scalar_lea.vmem %s3746_s27, %s566_s19  ;;  %s3712_s19 = smov 64  }
  0x79   : > { %v3351_v39 = vld [vmem:[%s567_s0] ss:$0 sm:$0xff]  ;;  %s3709_s27 = smov 40   ;;  %s3716_s0 = smov 8  }
  0xfc   : > { %v576_v2 = vpop.xlane.xlu0 %575 }
  0xfd   : > { %v578_v3 = vmul.f32 0.03125, %v576_v2 }
  0xff   : > { %v579_v4 = vsub.f32 %v570_v0, %v578_v3 }
 0x101   : > { %v580_v5 = vmul.f32 %v579_v4, %v579_v4 }
 0x103   : > { %v581_v6 = vsel %vm573_vm0, %v580_v5, 0.0 }
 0x104   : > { %582 = vadd.xlane.f32.xlu0 %v581_v6 }
 0x191   : > { %v583_v10 = vpop.xlane.xlu0 %582 }
 0x192   : > { %v584_v11 = vmul.f32 0.03125, %v583_v10 }
 0x194   : > { %v585_v12 = vadd.f32 1e-12, %v584_v11 }
 0x196   : > { %2813 = vrsqrt.f32 %v585_v12 }
 0x1a0   : > { %v2814_v13 = vpop.eup %2813 }
 0x1a1   : > { %v587_v15 = vmul.f32 %v2814_v13, %v579_v4 }
 0x1a3   : > { %v594_v17 = vmul.f32 %v2390_v14, %v587_v15 }
 0x1a5   : > { %v3299_v18 = vadd.f32 %v2391_v16, %v594_v17 }
 0x1a7   : > { %v602_v19 = vpack.c.bf16 %v3299_v18, %v3299_v18 }
 0x1a9   : > { %2556 = vmatmul.mubr.msk.bf16.vlgmr.msra.gmra.mrb[0].mxu1 %vm573_vm0, %v602_v19 }
 0x1aa   : > { %2561 = vmatprep.mubr.msk.bf16.mxu1 %vm3009_vm1, %v3008_v8 }
 0x27c   : > { %v663_v21 = vpop.f32.mrb[0].mxu1 }
 0x27d   : > { %v664_v22 = vadd.f32 %v2392_v20, %v663_v21  ;;  %v2557_v23 = vpop.f32.mrb[1].mxu1 }
 0x27e   : > { %v666_v24 = vpop.f32.mrb[2].mxu1 }
 0x27f   : > { %v3309_v25 = vpack.c.bf16 %v664_v22, %v664_v22  ;;  %v2558_v26 = vpop.f32.mrb[3].mxu1 }
 0x281   : > { %789 = vrot.lane.b32.xlu0 %v3309_v25, %s3010_s23  ;;  %671 = vrot.lane.b32.xlu1 %v3309_v25, %s3011_s30 }
 0x285   : > { %791 = vrot.lane.b32.xlu1 %v3309_v25, %s3012_s18 }
 0x289   : > { %903 = vrot.lane.b32.xlu1 %v3309_v25, %s3719_s29  ;;  %s3752_s29 = smov 104  }
 0x28d   : > { %901 = vrot.lane.b32.xlu1 %v3309_v25, %s3718_s24  ;;  %s3756_s24 = smov 40  }
 0x291   : > { %1015 = vrot.lane.b32.xlu1 %v3309_v25, %s3717_s26  ;;  %s3747_s26 = sld [smem:[#allocation21_spill]] }
 0x295   : > { %1013 = vrot.lane.b32.xlu1 %v3309_v25, %s3713_s28  ;;  %s3715_s28 = smov 16  }
 0x2f3   : > { %v672_v27 = vpop.permute.xlu1 %671  ;;  %v790_v32 = vpop.permute.xlu0 %789 }
 0x2f4   : > { %v678_v28 = vsel %vm673_vm2, %v672_v27, 0 }
 0x2f5   : > { %2560 = vmatpush3.bf16.xpose.msra.mxu1 %v678_v28 }
 0x2f6   : > { %2571 = vmatprep.subr.bf16.mxu1 %v3008_v8 }
 0x2f7   : > { %v792_v29 = vpop.permute.xlu1 %791 }
 0x2f8   : > { %v797_v30 = vsel %vm673_vm2, %v792_v29, 0 }
 0x2fb   : > { %v904_v31 = vpop.permute.xlu1 %903 }
 0x2fc   : > { %2562 = vmatmul.mubr.msk.bf16.vlgmr.msra.gmra.mrb[4].mxu1 %vm673_vm2, %v3309_v25  ;;  %v909_v34 = vsel %vm673_vm2, %v904_v31, 0 }
 0x2fd   : > { %2572 = vmatpush3.bf16.xpose.msra.mxu1 %v797_v30  ;;  %2573 = vmatprep.mubr.msk.bf16.mxu1 %vm3009_vm1, %v3008_v8 }
 0x2fe   : > { %2583 = vmatprep.subr.bf16.mxu1 %v3008_v8 }
 0x2ff   : > { %v902_v33 = vpop.permute.xlu1 %901 }
 0x303   : > { %v1016_v35 = vpop.permute.xlu1 %1015 }
 0x304   : > { %2574 = vmatmul.mubr.msk.bf16.vlgmr.msra.gmra.mrb[8].mxu1 %vm673_vm2, %v790_v32  ;;  %v1021_v36 = vsel %vm673_vm2, %v1016_v35, 0 }
 0x305   : > { %2584 = vmatpush3.bf16.xpose.msra.mxu1 %v909_v34  ;;  %2585 = vmatprep.mubr.msk.bf16.mxu1 %vm3009_vm1, %v3008_v8 }
 0x306   : > { %2595 = vmatprep.subr.bf16.mxu1 %v3008_v8 }
 0x307   : > { %v1014_v37 = vpop.permute.xlu1 %1013 }
 0x30c   : > { %2586 = vmatmul.mubr.msk.bf16.vlgmr.msra.gmra.mrb[12].mxu1 %vm673_vm2, %v902_v33 }
 0x30d   : > { %2596 = vmatpush3.bf16.xpose.msra.mxu1 %v1021_v36  ;;  %2597 = vmatprep.mubr.msk.bf16.mxu1 %vm3009_vm1, %v3008_v8 }
 0x30e   : > { %2607 = vmatprep.subr.bf16.mxu1 %v3008_v8 }
 0x314   : > { %2598 = vmatmul.mubr.msk.bf16.vlgmr.msra.gmra.mrb[16].mxu1 %vm673_vm2, %v1014_v37 }
 0x315   : > { %2611 = vmatprep.mubr.msk.bf16.mxu1 %vm3009_vm1, %v3008_v8 }
 0x3cf   : > { %v714_v38 = vpop.f32.mrb[4].mxu1 }
 0x3d0   : > { %v720_v40 = vmul.f32 0.35355338, %v714_v38  ;;  %v2563_v41 = vpop.f32.mrb[5].mxu1 }
 0x3d1   : > { %v717_v42 = vpop.f32.mrb[6].mxu1 }
 0x3d2   : > { %v2564_v43 = vpop.f32.mrb[7].mxu1  ;;  %v727_v44 = vadd.f32 %v3351_v39, %v720_v40 }
 0x3d4   : > { %v728_v45 = vsel %vm673_vm2, %v727_v44, -inf }
 0x3d5   : > { %729 = vmax.xlane.f32.xlu1 %v728_v45 }
 0x3d7   : > { %v833_v46 = vpop.f32.mrb[8].mxu1 }
 0x3d8   : > { %v839_v47 = vmul.f32 0.35355338, %v833_v46  ;;  %v2575_v48 = vpop.f32.mrb[9].mxu1 }
 0x3d9   : > { %v836_v49 = vpop.f32.mrb[10].mxu1 }
 0x3da   : > { %v2576_v50 = vpop.f32.mrb[11].mxu1  ;;  %v840_v51 = vadd.f32 %v3351_v39, %v839_v47 }
 0x3dc   : > { %v841_v52 = vsel %vm673_vm2, %v840_v51, -inf }
 0x3dd   : > { %842 = vmax.xlane.f32.xlu0 %v841_v52 }
 0x3df   : > { %v945_v53 = vpop.f32.mrb[12].mxu1 }
 0x3e0   : > { %v951_v54 = vmul.f32 0.35355338, %v945_v53  ;;  %v2587_v55 = vpop.f32.mrb[13].mxu1 }
 0x3e1   : > { %v948_v56 = vpop.f32.mrb[14].mxu1 }
 0x3e2   : > { %v2588_v57 = vpop.f32.mrb[15].mxu1  ;;  %v952_v58 = vadd.f32 %v3351_v39, %v951_v54 }
 0x3e4   : > { %v953_v59 = vsel %vm673_vm2, %v952_v58, -inf }
 0x3e5   : > { %954 = vmax.xlane.f32.xlu1 %v953_v59  ;;  %v2796_v59 = vld [vmem:[%s3687_s7 + $0x8] sm:$0xff]  }
 0x3e7   : > { %v1057_v60 = vpop.f32.mrb[16].mxu1 }
 0x3e8   : > { %v1063_v61 = vmul.f32 0.35355338, %v1057_v60  ;;  %v2599_v62 = vpop.f32.mrb[17].mxu1 }
 0x3e9   : > { %v1060_v63 = vpop.f32.mrb[18].mxu1 }
 0x3ea   : > { %v2600_v0 = vpop.f32.mrb[19].mxu1  ;;  %v1064_v1 = vadd.f32 %v3351_v39, %v1063_v61 }
 0x3ec   : > { %v1065_v2 = vsel %vm673_vm2, %v1064_v1, -inf }
 0x3ed   : > { %1066 = vmax.xlane.f32.xlu0 %v1065_v2 }
 0x462   : > { %v730_v3 = vpop.xlane.xlu1 %729 }
 0x463   : > { %v731_v4 = vsub.f32 %v727_v44, %v730_v3 }
 0x465   : > { %v732_v5 = vmul.f32 1.442695, %v731_v4 }
 0x467   : > { %2815 = vpow2.f32 %v732_v5 }
 0x46a   : > { %v843_v6 = vpop.xlane.xlu0 %842 }
 0x46b   : > { %v844_v7 = vsub.f32 %v840_v51, %v843_v6 }
 0x46d   : > { %v845_v9 = vmul.f32 1.442695, %v844_v7 }
 0x46f   : > { %2817 = vpow2.f32 %v845_v9 }
 0x471   : > { %v2816_v10 = vpop.eup %2815 }
 0x472   : > { %v734_v11 = vsel %vm673_vm2, %v2816_v10, 0.0  ;;  %v955_v20 = vpop.xlane.xlu1 %954 }
 0x473   : > { %735 = vadd.xlane.f32.xlu1 %v734_v11  ;;  %v956_v21 = vsub.f32 %v952_v58, %v955_v20  ;;  %v2795_v58 = vld [vmem:[%s3687_s7] sm:$0xff]  }
 0x474   : > { %2608 = vmatpush3.bf16.msra.mxu1 %v2795_v58  ;;  %v2415_v58 = vld [vmem:[%s3694_s14] ss:$0 sm:$0xff] }
 0x475   : > { %v957_v22 = vmul.f32 1.442695, %v956_v21  ;;  %2609 = vmatprep.subr.bf16.mxu1 %v3008_v8 }
 0x478   : > { %2610 = vmatpush3.bf16.msra.mxu1 %v2796_v59 }
 0x479   : > { %v2818_v12 = vpop.eup %2817  ;;  %2623 = vmatprep.subr.bf16.mxu1 %v3008_v8 }
 0x47a   : > { %v1067_v13 = vpop.xlane.xlu0 %1066  ;;  %v847_v14 = vsel %vm673_vm2, %v2818_v12, 0.0 }
 0x47b   : > { %v1068_v15 = vsub.f32 %v1064_v1, %v1067_v13  ;;  %848 = vadd.xlane.f32.xlu0 %v847_v14 }
 0x47d   : > { %v1069_v16 = vmul.f32 1.442695, %v1068_v15 }
 0x47f   : > { %2819 = vpow2.f32 %v1069_v16 }
 0x480   : > { %2821 = vpow2.f32 %v957_v22 }
 0x484   : > { %740 = vrot.lane.b32.xlu1 %v3309_v25, %s3712_s19  ;;  %s3749_s19 = smov 80  }
 0x489   : > { %v2820_v17 = vpop.eup %2819 }
 0x48a   : > { %v1071_v19 = vsel %vm673_vm2, %v2820_v17, 0.0  ;;  %v2822_v23 = vpop.eup %2821 }
 0x48b   : > { %1072 = vadd.xlane.f32.xlu0 %v1071_v19  ;;  %v959_v24 = vsel %vm673_vm2, %v2822_v23, 0.0 }
 0x4a1   : > { %853 = vrot.lane.b32.xlu0 %v3309_v25, %s3711_s17  ;;  %s3751_s17 = smov 72  }
 0x4a8   : > { %960 = vadd.xlane.f32.xlu1 %v959_v24 }
 0x4b9   : > { %965 = vrot.lane.b32.xlu1 %v3309_v25, %s3710_s1  ;;  %s3714_s1 = smov 24  }
 0x4bd   : > { %1077 = vrot.lane.b32.xlu1 %v3309_v25, %s3709_s27 }
 0x500   : > { %v736_v26 = vpop.xlane.xlu1 %735 }
 0x501   : > { %2823 = vrcp.f32 %v736_v26 }
 0x504   : > { %v741_v27 = vpop.permute.xlu1 %740 }
 0x505   : > { %v747_v28 = vsel %vm745_vm3, %v741_v27, 0  ;;  %v2797_v27 = vld [vmem:[%s3691_s11] sm:$0xff]  }
 0x506   : > { %2566 = vmatpush3.bf16.msra.mxu0 %v747_v28  ;;  %v2798_v28 = vld [vmem:[%s3691_s11 + $0x8] sm:$0xff]  }
 0x507   : > { %2577 = vmatprep.subr.bf16.mxu0 %v3008_v8 }
 0x508   : > { %v849_v30 = vpop.xlane.xlu0 %848 }
 0x509   : > { %2825 = vrcp.f32 %v849_v30 }
 0x50b   : > { %v2824_v29 = vpop.eup %2823 }
 0x50c   : > { %v738_v31 = vmul.f32 %v2824_v29, %v2816_v10 }
 0x50e   : > { %v739_v32 = vpack.c.bf16 %v738_v31, %v738_v31 }
 0x510   : > { %2568 = vmatmul.mubr.msk.bf16.vlgmr.msra.gmra.mrb[0].mxu0 %vm673_vm2, %v739_v32  ;;  %v2409_v32 = vld [vmem:[%s3689_s9] ss:$0 sm:$0xff] }
 0x511   : > { %2579 = vmatprep.mubr.msk.bf16.mxu0 %vm3009_vm1, %v3008_v8 }
 0x513   : > { %v2826_v25 = vpop.eup %2825 }
 0x514   : > { %v851_v34 = vmul.f32 %v2826_v25, %v2818_v12  ;;  %v2405_v12 = vld [vmem:[%s3688_s8] ss:$0 sm:$0xff] }
 0x516   : > { %v852_v37 = vpack.c.bf16 %v851_v34, %v851_v34 }
 0x518   : > { %v1073_v33 = vpop.xlane.xlu0 %1072 }
 0x51c   : > { %v854_v35 = vpop.permute.xlu0 %853 }
 0x51d   : > { %v859_v36 = vsel %vm745_vm3, %v854_v35, 0 }
 0x51e   : > { %2578 = vmatpush3.bf16.msra.mxu0 %v859_v36 }
 0x51f   : > { %2589 = vmatprep.subr.bf16.mxu0 %v3008_v8 }
 0x521   : > { %2580 = vmatmul.mubr.msk.bf16.vlgmr.msra.gmra.mrb[4].mxu0 %vm673_vm2, %v852_v37  ;;  %v2799_v37 = vld [vmem:[%s3693_s13] sm:$0xff]  }
 0x522   : > { %2591 = vmatprep.mubr.msk.bf16.mxu0 %vm3009_vm1, %v3008_v8 }
 0x535   : > { %v961_v38 = vpop.xlane.xlu1 %960 }
 0x536   : > { %2827 = vrcp.f32 %v961_v38  ;;  %v2800_v38 = vld [vmem:[%s3693_s13 + $0x8] sm:$0xff]  }
 0x537   : > { %2829 = vrcp.f32 %v1073_v33  ;;  %v2410_v33 = vld [vmem:[%s3747_s26] ss:$0 sm:$0xff] }
 0x539   : > { %v966_v40 = vpop.permute.xlu1 %965 }
 0x53a   : > { %v971_v41 = vsel %vm745_vm3, %v966_v40, 0  ;;  %v2801_v40 = vld [vmem:[%s3693_s13 + $0x10] sm:$0xff]  }
 0x53b   : > { %2590 = vmatpush3.bf16.msra.mxu0 %v971_v41  ;;  %v2802_v41 = vld [vmem:[%s3693_s13 + $0x18] sm:$0xff]  }
 0x53c   : > { %2601 = vmatprep.subr.bf16.mxu0 %v3008_v8 }
 0x53d   : > { %v1078_v44 = vpop.permute.xlu1 %1077 }
 0x53e   : > { %v1083_v47 = vsel %vm745_vm3, %v1078_v44, 0 }
 0x540   : > { %v2828_v42 = vpop.eup %2827 }
 0x541   : > { %v963_v43 = vmul.f32 %v2828_v42, %v2822_v23  ;;  %v2830_v46 = vpop.eup %2829  ;;  %v2411_v42 = vld [vmem:[%s3692_s12] ss:$0 sm:$0xff] }
 0x542   : > { %v1075_v48 = vmul.f32 %v2830_v46, %v2820_v17 }
 0x543   : > { %v964_v45 = vpack.c.bf16 %v963_v43, %v963_v43 }
 0x544   : > { %v1076_v49 = vpack.c.bf16 %v1075_v48, %v1075_v48 }
 0x545   : > { %2592 = vmatmul.mubr.msk.bf16.vlgmr.msra.gmra.mrb[8].mxu0 %vm673_vm2, %v964_v45 }
 0x546   : > { %2602 = vmatpush3.bf16.msra.mxu0 %v1083_v47  ;;  %2603 = vmatprep.mubr.msk.bf16.mxu0 %vm3009_vm1, %v3008_v8 }
 0x547   : > { %2615 = vmatprep.subr.bf16.mxu0 %v3008_v8 }
 0x54d   : > { %2604 = vmatmul.mubr.msk.bf16.vlgmr.msra.gmra.mrb[12].mxu0 %vm673_vm2, %v1076_v49 }
 0x54e   : > { %2619 = vmatprep.mubr.msk.bf16.mxu0 %vm3009_vm1, %v3008_v8  ;;  %2616 = vmatpush3.bf16.msra.mxu0 %v2797_v27 }
 0x54f   : > { %2617 = vmatprep.subr.bf16.mxu0 %v3008_v8 }
 0x552   : > { %2618 = vmatpush3.bf16.msra.mxu0 %v2798_v28 }
 0x553   : > { %2635 = vmatprep.subr.bf16.mxu0 %v3008_v8 }
 0x5e3   : > { %v783_v50 = vpop.f32.mrb[0].mxu0 }
 0x5e4   : > { %v2569_v51 = vpop.f32.mrb[1].mxu0 }
 0x5e5   : > { %v786_v52 = vpop.f32.mrb[2].mxu0 }
 0x5e6   : > { %v2570_v53 = vpop.f32.mrb[3].mxu0 }
 0x5f4   : > { %v895_v54 = vpop.f32.mrb[4].mxu0 }
 0x5f5   : > { %1126 = vrot.lane.b32.xlu0 %v895_v54, %s3716_s0  ;;  %v2581_v55 = vpop.f32.mrb[5].mxu0  ;;  %s3757_s0 = smov 8  }
 0x5f6   : > { %v898_v56 = vpop.f32.mrb[6].mxu0 }
 0x5f7   : > { %v2582_v57 = vpop.f32.mrb[7].mxu0 }
 0x618   : > { %v1007_v60 = vpop.f32.mrb[8].mxu0 }
 0x619   : > { %1130 = vrot.lane.b32.xlu1 %v1007_v60, %s3715_s28  ;;  %v2593_v61 = vpop.f32.mrb[9].mxu0  ;;  %s3748_s28 = sld [smem:[#allocation22_spill]] }
 0x61a   : > { %v1010_v62 = vpop.f32.mrb[10].mxu0 }
 0x61b   : > { %v2594_v63 = vpop.f32.mrb[11].mxu0 }
 0x620   : > { %v1119_v0 = vpop.f32.mrb[12].mxu0 }
 0x621   : > { %1134 = vrot.lane.b32.xlu0 %v1119_v0, %s3714_s1  ;;  %v2605_v1 = vpop.f32.mrb[13].mxu0  ;;  %s3750_s1 = smov 112  }
 0x622   : > { %v1122_v2 = vpop.f32.mrb[14].mxu0 }
 0x623   : > { %v2606_v3 = vpop.f32.mrb[15].mxu0 }
 0x667   : > { %v1127_v4 = vpop.permute.xlu0 %1126 }
 0x668   : > { %v1137_v6 = vsel %vm673_vm2, %v783_v50, %v1127_v4 }
 0x68b   : > { %v1131_v5 = vpop.permute.xlu1 %1130 }
 0x68c   : > { %v1139_v7 = vsel %vm1138_vm4, %v1137_v6, %v1131_v5 }
 0x693   : > { %v1135_v9 = vpop.permute.xlu0 %1134 }
 0x694   : > { %v1141_v10 = vsel %vm1140_vm5, %v1139_v7, %v1135_v9  ;;  %v2803_v7 = vld [vmem:[%s3685_s5 + $0x10] sm:$0xff]   ;;  %v2804_v9 = vld [vmem:[%s3685_s5 + $0x18] sm:$0xff]  }
 0x695   : > { %v1142_v11 = vpack.c.bf16 %v1141_v10, %v1141_v10 }
 0x697   : > { %2612 = vmatmul.mubr.msk.bf16.vlgmr.msra.gmra.mrb[20].mxu1 %vm573_vm0, %v1142_v11 }
 0x698   : > { %2631 = vmatprep.mubr.msk.bf16.mxu1 %vm3009_vm1, %v3008_v8  ;;  %2624 = vmatpush3.bf16.msra.mxu1 %v2799_v37 }
 0x699   : > { %2625 = vmatprep.subr.bf16.mxu1 %v3008_v8 }
 0x69c   : > { %2626 = vmatpush3.bf16.msra.mxu1 %v2800_v38 }
 0x69d   : > { %2627 = vmatprep.subr.bf16.mxu1 %v3008_v8 }
 0x6a0   : > { %2628 = vmatpush3.bf16.msra.mxu1 %v2801_v40 }
 0x6a1   : > { %2629 = vmatprep.subr.bf16.mxu1 %v3008_v8 }
 0x6a4   : > { %2630 = vmatpush3.bf16.msra.mxu1 %v2802_v41 }
 0x6a5   : > { %2649 = vmatprep.subr.bf16.mxu1 %v3008_v8 }
 0x76a   : > { %v1203_v13 = vpop.f32.mrb[20].mxu1 }
 0x76b   : > { %v1204_v14 = vadd.f32 %v2405_v12, %v1203_v13  ;;  %v2613_v15 = vpop.f32.mrb[21].mxu1 }
 0x76c   : > { %v1206_v16 = vpop.f32.mrb[22].mxu1 }
 0x76d   : > { %v2614_v17 = vpop.f32.mrb[23].mxu1  ;;  %v1209_v19 = vadd.f32 %v1204_v14, %v3299_v18  ;;  %v2421_v14 = vld [vmem:[%s3695_s15] ss:$0 sm:$0xff] }
 0x76e   : > { %v2422_v16 = vld [vmem:[%s3748_s28] ss:$0 sm:$0xff] }
 0x76f   : > { %v1212_v20 = vsel %vm573_vm0, %v1209_v19, 0.0 }
 0x770   : > { %1213 = vadd.xlane.f32.xlu1 %v1212_v20 }
 0x7fd   : > { %v1214_v21 = vpop.xlane.xlu1 %1213 }
 0x7fe   : > { %v1215_v22 = vmul.f32 0.03125, %v1214_v21  ;;  %v2428_v21 = vld [vmem:[%s3686_s6 + $0x1] ss:$0 sm:$0xff] }
 0x800   : > { %v1216_v23 = vsub.f32 %v1209_v19, %v1215_v22 }
 0x802   : > { %v1217_v24 = vmul.f32 %v1216_v23, %v1216_v23 }
 0x804   : > { %v1218_v26 = vsel %vm573_vm0, %v1217_v24, 0.0 }
 0x805   : > { %1219 = vadd.xlane.f32.xlu0 %v1218_v26 }
 0x892   : > { %v1220_v18 = vpop.xlane.xlu0 %1219 }
 0x893   : > { %v1221_v29 = vmul.f32 0.03125, %v1220_v18 }
 0x895   : > { %v1222_v30 = vadd.f32 1e-12, %v1221_v29 }
 0x897   : > { %2831 = vrsqrt.f32 %v1222_v30 }
 0x8a1   : > { %v2832_v31 = vpop.eup %2831 }
 0x8a2   : > { %v1224_v25 = vmul.f32 %v2832_v31, %v1216_v23 }
 0x8a4   : > { %v1231_v34 = vmul.f32 %v2409_v32, %v1224_v25 }
 0x8a6   : > { %v1238_v35 = vadd.f32 %v2410_v33, %v1231_v34 }
 0x8a8   : > { %v1239_v36 = vpack.c.bf16 %v1238_v35, %v1238_v35 }
 0x8aa   : > { %2620 = vmatmul.mubr.msk.bf16.vlgmr.msra.gmra.mrb[16].mxu0 %vm573_vm0, %v1239_v36 }
 0x8ab   : > { %2639 = vmatprep.mubr.msk.bf16.mxu0 %vm3009_vm1, %v3008_v8  ;;  %2636 = vmatpush3.bf16.msra.mxu0 %v2803_v7 }
 0x8ac   : > { %2637 = vmatprep.subr.bf16.mxu0 %v3008_v8 }
 0x8af   : > { %2638 = vmatpush3.bf16.msra.mxu0 %v2804_v9 }
 0x8b0   : > { %2643 = vmatprep.subr.bf16.mxu0 %v3008_v8 }
 0x97d   : > { %v1300_v43 = vpop.f32.mrb[16].mxu0 }
 0x97e   : > { %v1301_v44 = vadd.f32 %v2411_v42, %v1300_v43  ;;  %v2621_v45 = vpop.f32.mrb[17].mxu0 }
 0x97f   : > { %v1303_v46 = vpop.f32.mrb[18].mxu0 }
 0x980   : > { %v1307_v47 = vmul.f32 0.044715, %v1301_v44  ;;  %v2622_v48 = vpop.f32.mrb[19].mxu0  ;;  %v1306_v54 = vmul.f32 0.5, %v1301_v44 }
 0x982   : > { %v1308_v49 = vmul.f32 %v1307_v47, %v1301_v44 }
 0x984   : > { %v1309_v50 = vmul.f32 %v1308_v49, %v1301_v44 }
 0x986   : > { %v1310_v51 = vadd.f32 %v1309_v50, %v1301_v44 }
 0x988   : > { %v1311_v52 = vmul.f32 0.7978846, %v1310_v51 }
 0x98a   : > { %2833 = vtanh.f32 %v1311_v52 }
 0x994   : > { %v2834_v53 = vpop.eup %2833 }
 0x995   : > { %v1313_v55 = vadd.f32 1.0, %v2834_v53 }
 0x997   : > { %v1314_v56 = vmul.f32 %v1313_v55, %v1306_v54 }
 0x999   : > { %v1315_v57 = vpack.c.bf16 %v1314_v56, %v1314_v56 }
 0x99b   : > { %2632 = vmatmul.mubr.msk.bf16.vlgmr.msra.gmra.mrb[24].mxu1 %vm1355_vm6, %v1315_v57 }
 0x99c   : > { %2651 = vmatprep.mubr.msk.bf16.mxu1 %vm3009_vm1, %v3008_v8 }
 0xa6e   : > { %v1393_v59 = vpop.f32.mrb[24].mxu1 }
 0xa6f   : > { %v1394_v60 = vadd.f32 %v2415_v58, %v1393_v59  ;;  %v2633_v61 = vpop.f32.mrb[25].mxu1 }
 0xa70   : > { %v1396_v62 = vpop.f32.mrb[26].mxu1 }
 0xa71   : > { %v2634_v63 = vpop.f32.mrb[27].mxu1  ;;  %v1399_v0 = vadd.f32 %v1394_v60, %v1238_v35 }
 0xa73   : > { %v1402_v1 = vsel %vm573_vm0, %v1399_v0, 0.0 }
 0xa74   : > { %1403 = vadd.xlane.f32.xlu0 %v1402_v1 }
 0xb01   : > { %v1404_v2 = vpop.xlane.xlu0 %1403 }
 0xb02   : > { %v1405_v3 = vmul.f32 0.03125, %v1404_v2 }
 0xb04   : > { %v1406_v4 = vsub.f32 %v1399_v0, %v1405_v3 }
 0xb06   : > { %v1407_v5 = vmul.f32 %v1406_v4, %v1406_v4 }
 0xb08   : > { %v1408_v6 = vsel %vm573_vm0, %v1407_v5, 0.0 }
 0xb09   : > { %1409 = vadd.xlane.f32.xlu1 %v1408_v6 }
 0xb96   : > { %v1410_v10 = vpop.xlane.xlu1 %1409 }
 0xb97   : > { %v1411_v11 = vmul.f32 0.03125, %v1410_v10 }
 0xb99   : > { %v1412_v12 = vadd.f32 1e-12, %v1411_v11 }
 0xb9b   : > { %2835 = vrsqrt.f32 %v1412_v12 }
 0xba5   : > { %v2836_v13 = vpop.eup %2835 }
 0xba6   : > { %v1414_v15 = vmul.f32 %v2836_v13, %v1406_v4 }
 0xba8   : > { %v1421_v17 = vmul.f32 %v2421_v14, %v1414_v15 }
 0xbaa   : > { %v3474_v19 = vadd.f32 %v2422_v16, %v1421_v17 }
 0xbac   : > { %v1429_v20 = vpack.c.bf16 %v3474_v19, %v3474_v19 }
 0xbae   : > { %2640 = vmatmul.mubr.msk.bf16.vlgmr.msra.gmra.mrb[20].mxu0 %vm573_vm0, %v1429_v20 }
 0xbaf   : > { %2645 = vmatprep.mubr.msk.bf16.mxu0 %vm3009_vm1, %v3008_v8 }
 0xc81   : > { %v1492_v22 = vpop.f32.mrb[20].mxu0 }
 0xc82   : > { %v1493_v23 = vadd.f32 %v2428_v21, %v1492_v22  ;;  %v2641_v24 = vpop.f32.mrb[21].mxu0 }
 0xc83   : > { %v1495_v26 = vpop.f32.mrb[22].mxu0 }
 0xc84   : > { %v3484_v27 = vpack.c.bf16 %v1493_v23, %v1493_v23  ;;  %v2642_v28 = vpop.f32.mrb[23].mxu0 }
 0xc86   : > { %1612 = vrot.lane.b32.xlu1 %v3484_v27, %s3012_s18  ;;  %1500 = vrot.lane.b32.xlu0 %v3484_v27, %s3011_s30  ;;  %s3754_s30 = smov 56   ;;  %s3755_s18 = smov 48  }
 0xc8a   : > { %1610 = vrot.lane.b32.xlu1 %v3484_v27, %s3010_s23  ;;  %1724 = vrot.lane.b32.xlu0 %v3484_v27, %s3749_s19  ;;  %s3753_s23 = smov 64   ;;  %s2283_s19 = scalar_lea.sflag [#allocation7], %s3268_s4 }
 0xc8e   : > { %1722 = vrot.lane.b32.xlu1 %v3484_v27, %s3750_s1  ;;  %1836 = vrot.lane.b32.xlu0 %v3484_v27, %s3751_s17 }
 0xc92   : > { %1834 = vrot.lane.b32.xlu1 %v3484_v27, %s3752_s29  ;;  %s3758_s29 = smov 16  }
 0xcf8   : > { %v1501_v18 = vpop.permute.xlu0 %1500  ;;  %v1613_v30 = vpop.permute.xlu1 %1612 }
 0xcf9   : > { %v1506_v29 = vsel %vm673_vm2, %v1501_v18, 0  ;;  %v1618_v31 = vsel %vm673_vm2, %v1613_v30, 0 }
 0xcfa   : > { %2644 = vmatpush3.bf16.xpose.msra.mxu0 %v1506_v29 }
 0xcfb   : > { %2655 = vmatprep.subr.bf16.mxu0 %v3008_v8 }
 0xcfc   : > { %v1725_v32 = vpop.permute.xlu0 %1724  ;;  %v1611_v25 = vpop.permute.xlu1 %1610 }
 0xcfd   : > { %v1730_v33 = vsel %vm673_vm2, %v1725_v32, 0 }
 0xd00   : > { %v1837_v34 = vpop.permute.xlu0 %1836  ;;  %v1723_v35 = vpop.permute.xlu1 %1722 }
 0xd01   : > { %2646 = vmatmul.mubr.msk.bf16.vlgmr.msra.gmra.mrb[24].mxu0 %vm673_vm2, %v3484_v27  ;;  %v1842_v36 = vsel %vm673_vm2, %v1837_v34, 0 }
 0xd02   : > { %2656 = vmatpush3.bf16.xpose.msra.mxu0 %v1618_v31  ;;  %2657 = vmatprep.mubr.msk.bf16.mxu0 %vm3009_vm1, %v3008_v8 }
 0xd03   : > { %2667 = vmatprep.subr.bf16.mxu0 %v3008_v8 }
 0xd04   : > { %v1835_v37 = vpop.permute.xlu1 %1834 }
 0xd09   : > { %2658 = vmatmul.mubr.msk.bf16.vlgmr.msra.gmra.mrb[28].mxu0 %vm673_vm2, %v1611_v25 }
 0xd0a   : > { %2668 = vmatpush3.bf16.xpose.msra.mxu0 %v1730_v33  ;;  %2669 = vmatprep.mubr.msk.bf16.mxu0 %vm3009_vm1, %v3008_v8 }
 0xd0b   : > { %2679 = vmatprep.subr.bf16.mxu0 %v3008_v8 }
 0xd11   : > { %2670 = vmatmul.mubr.msk.bf16.vlgmr.msra.gmra.mrb[32].mxu0 %vm673_vm2, %v1723_v35 }
 0xd12   : > { %2680 = vmatpush3.bf16.xpose.msra.mxu0 %v1842_v36  ;;  %2681 = vmatprep.mubr.msk.bf16.mxu0 %vm3009_vm1, %v3008_v8 }
 0xd13   : > { %2691 = vmatprep.subr.bf16.mxu0 %v3008_v8 }
 0xd19   : > { %2682 = vmatmul.mubr.msk.bf16.vlgmr.msra.gmra.mrb[36].mxu0 %vm673_vm2, %v1835_v37 }
 0xd1a   : > { %2695 = vmatprep.mubr.msk.bf16.mxu0 %vm3009_vm1, %v3008_v8 }
 0xdd4   : > { %v1542_v38 = vpop.f32.mrb[24].mxu0 }
 0xdd5   : > { %v1548_v40 = vmul.f32 0.35355338, %v1542_v38  ;;  %v2647_v41 = vpop.f32.mrb[25].mxu0 }
 0xdd6   : > { %v1545_v42 = vpop.f32.mrb[26].mxu0 }
 0xdd7   : > { %v2648_v43 = vpop.f32.mrb[27].mxu0  ;;  %v1549_v44 = vadd.f32 %v3351_v39, %v1548_v40 }
 0xdd9   : > { %v1550_v45 = vsel %vm673_vm2, %v1549_v44, -inf }
 0xdda   : > { %1551 = vmax.xlane.f32.xlu0 %v1550_v45 }
 0xddc   : > { %v1654_v46 = vpop.f32.mrb[28].mxu0 }
 0xddd   : > { %v1660_v47 = vmul.f32 0.35355338, %v1654_v46  ;;  %v2659_v48 = vpop.f32.mrb[29].mxu0 }
 0xdde   : > { %v1657_v49 = vpop.f32.mrb[30].mxu0 }
 0xddf   : > { %v2660_v50 = vpop.f32.mrb[31].mxu0  ;;  %v1661_v51 = vadd.f32 %v3351_v39, %v1660_v47 }
 0xde1   : > { %v1662_v52 = vsel %vm673_vm2, %v1661_v51, -inf }
 0xde2   : > { %1663 = vmax.xlane.f32.xlu1 %v1662_v52 }
 0xde4   : > { %v1766_v53 = vpop.f32.mrb[32].mxu0 }
 0xde5   : > { %v1772_v54 = vmul.f32 0.35355338, %v1766_v53  ;;  %v2671_v55 = vpop.f32.mrb[33].mxu0 }
 0xde6   : > { %v1769_v56 = vpop.f32.mrb[34].mxu0 }
 0xde7   : > { %v2672_v57 = vpop.f32.mrb[35].mxu0  ;;  %v1773_v58 = vadd.f32 %v3351_v39, %v1772_v54 }
 0xde8   : > { %v2805_v57 = vld [vmem:[%s3687_s7 + $0x10] sm:$0xff]  }
 0xde9   : > { %v1774_v59 = vsel %vm673_vm2, %v1773_v58, -inf  ;;  %2692 = vmatpush3.bf16.msra.mxu0 %v2805_v57 }
 0xdea   : > { %1775 = vmax.xlane.f32.xlu0 %v1774_v59  ;;  %2693 = vmatprep.subr.bf16.mxu0 %v3008_v8 }
 0xdec   : > { %v1878_v60 = vpop.f32.mrb[36].mxu0 }
 0xded   : > { %v1884_v61 = vmul.f32 0.35355338, %v1878_v60  ;;  %v2683_v62 = vpop.f32.mrb[37].mxu0 }
 0xdee   : > { %v1881_v63 = vpop.f32.mrb[38].mxu0 }
 0xdef   : > { %v2684_v0 = vpop.f32.mrb[39].mxu0  ;;  %v1885_v1 = vadd.f32 %v3351_v39, %v1884_v61 }
 0xdf1   : > { %v1886_v2 = vsel %vm673_vm2, %v1885_v1, -inf }
 0xdf2   : > { %1887 = vmax.xlane.f32.xlu0 %v1886_v2 }
 0xe67   : > { %v1552_v3 = vpop.xlane.xlu0 %1551 }
 0xe68   : > { %v1553_v4 = vsub.f32 %v1549_v44, %v1552_v3 }
 0xe6a   : > { %v1554_v5 = vmul.f32 1.442695, %v1553_v4 }
 0xe6c   : > { %2837 = vpow2.f32 %v1554_v5 }
 0xe6f   : > { %v1664_v6 = vpop.xlane.xlu1 %1663 }
 0xe70   : > { %v1665_v7 = vsub.f32 %v1661_v51, %v1664_v6 }
 0xe72   : > { %v1666_v9 = vmul.f32 1.442695, %v1665_v7 }
 0xe74   : > { %2839 = vpow2.f32 %v1666_v9 }
 0xe76   : > { %v2838_v10 = vpop.eup %2837 }
 0xe77   : > { %v1556_v11 = vsel %vm673_vm2, %v2838_v10, 0.0  ;;  %v1776_v12 = vpop.xlane.xlu0 %1775 }
 0xe78   : > { %1557 = vadd.xlane.f32.xlu1 %v1556_v11  ;;  %v1777_v21 = vsub.f32 %v1773_v58, %v1776_v12  ;;  %v2806_v58 = vld [vmem:[%s3687_s7 + $0x18] sm:$0xff]   ;;  %v2445_v11 = vld [vmem:[%s3688_s8 + $0x1] ss:$0 sm:$0xff] }
 0xe79   : > { %2694 = vmatpush3.bf16.msra.mxu0 %v2806_v58 }
 0xe7a   : > { %v1778_v22 = vmul.f32 1.442695, %v1777_v21  ;;  %2707 = vmatprep.subr.bf16.mxu0 %v3008_v8 }
 0xe7e   : > { %v2840_v13 = vpop.eup %2839 }
 0xe7f   : > { %v1888_v14 = vpop.xlane.xlu0 %1887  ;;  %v1668_v39 = vsel %vm673_vm2, %v2840_v13, 0.0 }
 0xe80   : > { %v1889_v15 = vsub.f32 %v1885_v1, %v1888_v14  ;;  %1669 = vadd.xlane.f32.xlu0 %v1668_v39 }
 0xe82   : > { %v1890_v16 = vmul.f32 1.442695, %v1889_v15 }
 0xe84   : > { %2841 = vpow2.f32 %v1890_v16 }
 0xe85   : > { %2843 = vpow2.f32 %v1778_v22 }
 0xe89   : > { %1562 = vrot.lane.b32.xlu1 %v3484_v27, %s3753_s23  ;;  %s3759_s23 = smov 24  }
 0xe8e   : > { %v2842_v17 = vpop.eup %2841 }
 0xe8f   : > { %v1892_v20 = vsel %vm673_vm2, %v2842_v17, 0.0  ;;  %v2844_v23 = vpop.eup %2843 }
 0xe90   : > { %1893 = vadd.xlane.f32.xlu0 %v1892_v20  ;;  %v1780_v24 = vsel %vm673_vm2, %v2844_v23, 0.0 }
 0xea6   : > { %1674 = vrot.lane.b32.xlu0 %v3484_v27, %s3754_s30 }
 0xead   : > { %1781 = vadd.xlane.f32.xlu1 %v1780_v24 }
 0xebe   : > { %1786 = vrot.lane.b32.xlu1 %v3484_v27, %s3755_s18 }
 0xec2   : > { %1898 = vrot.lane.b32.xlu1 %v3484_v27, %s3756_s24  ;;  %s2258_s24 = sld [smem:[#allocation4 + %s3148_s22]] }
 0xec8   : > { %p2259_p12 = scmp.gt.s32.totalorder %s2258_s24, 0  ;;  %p2481_p1 = scmp.lt.s32.totalorder %s2258_s24, 7 }
 0xeca   : > { %s3770_s24 = smov (!%p2259_p12, %s2258_s24), 0 }
 0xecb   : > { %s3772_s24 = smov (!%p2481_p1, %s3770_s24), 7 }
 0xecc   : > { %s2263_s17 = scalar_lea.vmem [#allocation2], %s3772_s24 }
 0xf05   : > { %v1558_v26 = vpop.xlane.xlu1 %1557 }
 0xf06   : > { %2845 = vrcp.f32 %v1558_v26  ;;  %v2807_v26 = vld [vmem:[%s3691_s11 + $0x10] sm:$0xff]  }
 0xf09   : > { %v1563_v28 = vpop.permute.xlu1 %1562 }
 0xf0a   : > { %v1568_v18 = vsel %vm745_vm3, %v1563_v28, 0  ;;  %v2808_v28 = vld [vmem:[%s3691_s11 + $0x18] sm:$0xff]  }
 0xf0b   : > { %2650 = vmatpush3.bf16.msra.mxu1 %v1568_v18 }
 0xf0c   : > { %2661 = vmatprep.subr.bf16.mxu1 %v3008_v8 }
 0xf0d   : > { %v1670_v30 = vpop.xlane.xlu0 %1669 }
 0xf0e   : > { %2847 = vrcp.f32 %v1670_v30 }
 0xf10   : > { %v2846_v29 = vpop.eup %2845 }
 0xf11   : > { %v1560_v31 = vmul.f32 %v2846_v29, %v2838_v10 }
 0xf13   : > { %v1561_v32 = vpack.c.bf16 %v1560_v31, %v1560_v31  ;;  %v2451_v31 = vld [vmem:[%s3689_s9 + $0x1] ss:$0 sm:$0xff] }
 0xf15   : > { %2652 = vmatmul.mubr.msk.bf16.vlgmr.msra.gmra.mrb[28].mxu1 %vm673_vm2, %v1561_v32 }
 0xf16   : > { %2663 = vmatprep.mubr.msk.bf16.mxu1 %vm3009_vm1, %v3008_v8 }
 0xf18   : > { %v2848_v25 = vpop.eup %2847 }
 0xf19   : > { %v1672_v33 = vmul.f32 %v2848_v25, %v2840_v13  ;;  %v2452_v25 = vld [vmem:[%s3747_s26 + $0x1] ss:$0 sm:$0xff] }
 0xf1b   : > { %v1673_v36 = vpack.c.bf16 %v1672_v33, %v1672_v33 }
 0xf1d   : > { %v1894_v27 = vpop.xlane.xlu0 %1893 }
 0xf21   : > { %v1675_v34 = vpop.permute.xlu0 %1674 }
 0xf22   : > { %v1680_v35 = vsel %vm745_vm3, %v1675_v34, 0 }
 0xf23   : > { %2662 = vmatpush3.bf16.msra.mxu1 %v1680_v35  ;;  %v2809_v35 = vld [vmem:[%s3693_s13 + $0x20] sm:$0xff]  }
 0xf24   : > { %2673 = vmatprep.subr.bf16.mxu1 %v3008_v8 }
 0xf26   : > { %2664 = vmatmul.mubr.msk.bf16.vlgmr.msra.gmra.mrb[32].mxu1 %vm673_vm2, %v1673_v36  ;;  %v2810_v36 = vld [vmem:[%s3693_s13 + $0x28] sm:$0xff]  }
 0xf27   : > { %2675 = vmatprep.mubr.msk.bf16.mxu1 %vm3009_vm1, %v3008_v8 }
 0xf3a   : > { %v1782_v37 = vpop.xlane.xlu1 %1781 }
 0xf3b   : > { %2849 = vrcp.f32 %v1782_v37  ;;  %v2811_v37 = vld [vmem:[%s3693_s13 + $0x30] sm:$0xff]  }
 0xf3c   : > { %2851 = vrcp.f32 %v1894_v27 }
 0xf3e   : > { %v1787_v38 = vpop.permute.xlu1 %1786 }
 0xf3f   : > { %v1792_v40 = vsel %vm745_vm3, %v1787_v38, 0  ;;  %v2812_v38 = vld [vmem:[%s3693_s13 + $0x38] sm:$0xff]  }
 0xf40   : > { %2674 = vmatpush3.bf16.msra.mxu1 %v1792_v40  ;;  %v2458_v40 = vld [vmem:[%s3692_s12 + $0x1] ss:$0 sm:$0xff] }
 0xf41   : > { %2685 = vmatprep.subr.bf16.mxu1 %v3008_v8 }
 0xf42   : > { %v1899_v43 = vpop.permute.xlu1 %1898 }
 0xf43   : > { %v1904_v46 = vsel %vm745_vm3, %v1899_v43, 0 }
 0xf45   : > { %v2850_v41 = vpop.eup %2849 }
 0xf46   : > { %v1784_v42 = vmul.f32 %v2850_v41, %v2844_v23  ;;  %v2852_v45 = vpop.eup %2851 }
 0xf47   : > { %v1896_v47 = vmul.f32 %v2852_v45, %v2842_v17 }
 0xf48   : > { %v1785_v44 = vpack.c.bf16 %v1784_v42, %v1784_v42 }
 0xf49   : > { %v1897_v48 = vpack.c.bf16 %v1896_v47, %v1896_v47 }
 0xf4a   : > { %2676 = vmatmul.mubr.msk.bf16.vlgmr.msra.gmra.mrb[36].mxu1 %vm673_vm2, %v1785_v44 }
 0xf4b   : > { %2686 = vmatpush3.bf16.msra.mxu1 %v1904_v46  ;;  %2687 = vmatprep.mubr.msk.bf16.mxu1 %vm3009_vm1, %v3008_v8 }
 0xf4c   : > { %2699 = vmatprep.subr.bf16.mxu1 %v3008_v8 }
 0xf52   : > { %2688 = vmatmul.mubr.msk.bf16.vlgmr.msra.gmra.mrb[40].mxu1 %vm673_vm2, %v1897_v48 }
 0xf53   : > { %2703 = vmatprep.mubr.msk.bf16.mxu1 %vm3009_vm1, %v3008_v8  ;;  %2700 = vmatpush3.bf16.msra.mxu1 %v2807_v26 }
 0xf54   : > { %2701 = vmatprep.subr.bf16.mxu1 %v3008_v8 }
 0xf57   : > { %2702 = vmatpush3.bf16.msra.mxu1 %v2808_v28 }
 0xfe8   : > { %v1604_v49 = vpop.f32.mrb[28].mxu1 }
 0xfe9   : > { %v2653_v50 = vpop.f32.mrb[29].mxu1 }
 0xfea   : > { %v1607_v51 = vpop.f32.mrb[30].mxu1 }
 0xfeb   : > { %v2654_v52 = vpop.f32.mrb[31].mxu1 }
 0xff9   : > { %v1716_v53 = vpop.f32.mrb[32].mxu1 }
 0xffa   : > { %1947 = vrot.lane.b32.xlu0 %v1716_v53, %s3757_s0  ;;  %v2665_v54 = vpop.f32.mrb[33].mxu1  ;;  %s3760_s0 = sld [smem:[#allocation23_spill]] }
 0xffb   : > { %v1719_v55 = vpop.f32.mrb[34].mxu1 }
 0xffc   : > { %v2666_v56 = vpop.f32.mrb[35].mxu1  ;;  %v2471_v55 = vld [vmem:[%s3694_s14 + $0x1] ss:$0 sm:$0xff] }
0x101d   : > { %v1828_v59 = vpop.f32.mrb[36].mxu1 }
0x101e   : > { %1951 = vrot.lane.b32.xlu1 %v1828_v59, %s3758_s29  ;;  %v2677_v60 = vpop.f32.mrb[37].mxu1  ;;  %s2486_s29 = sshll.u32 %s3148_s22, 4  ;;  %s3024_s22 = smov [#allocation10]  }
0x101f   : > { %v1831_v61 = vpop.f32.mrb[38].mxu1  ;;  %s3635_s27 = scalar_lea.hbm %s3760_s0, %s2486_s29 }
0x1020   : > { %v2678_v62 = vpop.f32.mrb[39].mxu1 }
0x1025   : > { %v1940_v63 = vpop.f32.mrb[40].mxu1 }
0x1026   : > { %1955 = vrot.lane.b32.xlu0 %v1940_v63, %s3759_s23  ;;  %v2689_v0 = vpop.f32.mrb[41].mxu1  ;;  %s564_s23 = scalar_lea.vmem [#allocation10], %s3268_s4 }
0x1027   : > { %v1943_v1 = vpop.f32.mrb[42].mxu1  ;;  %s2295_s30 = sshll.u32 %s564_s23, 4  ;;  %s3637_s30 = int_to_ptr.vmem [resolvable:$true] %s2295_s30 }
0x1028   : > { %v2690_v2 = vpop.f32.mrb[43].mxu1  ;;  %s2931_s1 = scalar_lea.vmem %s3637_s30, 16 }
0x1029   : > { %p2932_p2 = scmp.ne.s32.totalorder %s3637_s30, %s2931_s1 }
0x102b   : > { %p2933_p3 = pnand %p2932_p2, %p3219_p11 }
0x102d   : > { %p2934_p8 = pneg %p2933_p3 }
0x106c   : > { %v1948_v3 = vpop.permute.xlu0 %1947 }
0x106d   : > { %v1958_v5 = vsel %vm673_vm2, %v1604_v49, %v1948_v3 }
0x1090   : > { %v1952_v4 = vpop.permute.xlu1 %1951 }
0x1091   : > { %v1959_v6 = vsel %vm1138_vm4, %v1958_v5, %v1952_v4 }
0x1098   : > { %v1956_v7 = vpop.permute.xlu0 %1955 }
0x1099   : > { %v1960_v9 = vsel %vm1140_vm5, %v1959_v6, %v1956_v7 }
0x109a   : > { %v1961_v10 = vpack.c.bf16 %v1960_v9, %v1960_v9  ;;  %v2479_v9 = vld [vmem:[%s3695_s15 + $0x1] ss:$0 sm:$0xff] }
0x109c   : > { %2696 = vmatmul.mubr.msk.bf16.vlgmr.msra.gmra.mrb[40].mxu0 %vm573_vm0, %v1961_v10 }
0x109d   : > { %2715 = vmatprep.mubr.msk.bf16.mxu0 %vm3009_vm1, %v3008_v8  ;;  %2708 = vmatpush3.bf16.msra.mxu0 %v2809_v35 }
0x109e   : > { %2709 = vmatprep.subr.bf16.mxu0 %v3008_v8 }
0x10a1   : > { %2710 = vmatpush3.bf16.msra.mxu0 %v2810_v36 }
0x10a2   : > { %2711 = vmatprep.subr.bf16.mxu0 %v3008_v8 }
0x10a5   : > { %2712 = vmatpush3.bf16.msra.mxu0 %v2811_v37 }
0x10a6   : > { %2713 = vmatprep.subr.bf16.mxu0 %v3008_v8 }
0x10a9   : > { %2714 = vmatpush3.bf16.msra.mxu0 %v2812_v38 }
0x116f   : > { %v2024_v12 = vpop.f32.mrb[40].mxu0 }
0x1170   : > { %v2025_v13 = vadd.f32 %v2445_v11, %v2024_v12  ;;  %v2697_v14 = vpop.f32.mrb[41].mxu0  ;;  %v2480_v11 = vld [vmem:[%s3748_s28 + $0x1] ss:$0 sm:$0xff] }
0x1171   : > { %v2027_v39 = vpop.f32.mrb[42].mxu0 }
0x1172   : > { %v2698_v15 = vpop.f32.mrb[43].mxu0  ;;  %v2030_v16 = vadd.f32 %v2025_v13, %v3474_v19 }
0x1174   : > { %v2035_v17 = vsel %vm573_vm0, %v2030_v16, 0.0 }
0x1175   : > { %2036 = vadd.xlane.f32.xlu1 %v2035_v17 }
0x1202   : > { %v2037_v20 = vpop.xlane.xlu1 %2036 }
0x1203   : > { %v2038_v21 = vmul.f32 0.03125, %v2037_v20 }
0x1205   : > { %v2039_v22 = vsub.f32 %v2030_v16, %v2038_v21 }
0x1207   : > { %v2040_v23 = vmul.f32 %v2039_v22, %v2039_v22 }
0x1209   : > { %v2041_v24 = vsel %vm573_vm0, %v2040_v23, 0.0 }
0x120a   : > { %2042 = vadd.xlane.f32.xlu0 %v2041_v24 }
0x1297   : > { %v2043_v19 = vpop.xlane.xlu0 %2042 }
0x1298   : > { %v2044_v18 = vmul.f32 0.03125, %v2043_v19 }
0x129a   : > { %v2045_v29 = vadd.f32 1e-12, %v2044_v18 }
0x129c   : > { %2853 = vrsqrt.f32 %v2045_v29 }
0x12a6   : > { %v2854_v30 = vpop.eup %2853 }
0x12a7   : > { %v2047_v32 = vmul.f32 %v2854_v30, %v2039_v22 }
0x12a9   : > { %v2054_v27 = vmul.f32 %v2451_v31, %v2047_v32 }
0x12ab   : > { %v2061_v33 = vadd.f32 %v2452_v25, %v2054_v27 }
0x12ad   : > { %v2062_v34 = vpack.c.bf16 %v2061_v33, %v2061_v33 }
0x12af   : > { %2704 = vmatmul.mubr.msk.bf16.vlgmr.msra.gmra.mrb[44].mxu1 %vm573_vm0, %v2062_v34 }
0x1382   : > { %v2125_v41 = vpop.f32.mrb[44].mxu1 }
0x1383   : > { %v2126_v42 = vadd.f32 %v2458_v40, %v2125_v41  ;;  %v2705_v43 = vpop.f32.mrb[45].mxu1 }
0x1384   : > { %v2128_v44 = vpop.f32.mrb[46].mxu1 }
0x1385   : > { %v2132_v45 = vmul.f32 0.044715, %v2126_v42  ;;  %v2706_v46 = vpop.f32.mrb[47].mxu1  ;;  %v2131_v52 = vmul.f32 0.5, %v2126_v42 }
0x1387   : > { %v2133_v47 = vmul.f32 %v2132_v45, %v2126_v42 }
0x1389   : > { %v2134_v48 = vmul.f32 %v2133_v47, %v2126_v42 }
0x138b   : > { %v2135_v49 = vadd.f32 %v2134_v48, %v2126_v42 }
0x138d   : > { %v2136_v50 = vmul.f32 0.7978846, %v2135_v49 }
0x138f   : > { %2855 = vtanh.f32 %v2136_v50 }
0x1399   : > { %v2856_v51 = vpop.eup %2855 }
0x139a   : > { %v2138_v53 = vadd.f32 1.0, %v2856_v51 }
0x139c   : > { %v2139_v8 = vmul.f32 %v2138_v53, %v2131_v52 }
0x139e   : > { %v2140_v54 = vpack.c.bf16 %v2139_v8, %v2139_v8 }
0x13a0   : > { %2716 = vmatmul.mubr.msk.bf16.vlgmr.msra.gmra.mrb[44].mxu0 %vm1355_vm6, %v2140_v54 }
0x1473   : > { %v2219_v56 = vpop.f32.mrb[44].mxu0 }
0x1474   : > { %v2220_v57 = vadd.f32 %v2471_v55, %v2219_v56  ;;  %v2717_v58 = vpop.f32.mrb[45].mxu0 }
0x1475   : > { %v2222_v59 = vpop.f32.mrb[46].mxu0 }
0x1476   : > { %v2718_v60 = vpop.f32.mrb[47].mxu0  ;;  %v2225_v61 = vadd.f32 %v2220_v57, %v2061_v33 }
0x1478   : > { %v2230_v62 = vsel %vm573_vm0, %v2225_v61, 0.0 }
0x1479   : > { %2231 = vadd.xlane.f32.xlu0 %v2230_v62 }
0x1506   : > { %v2232_v63 = vpop.xlane.xlu0 %2231 }
0x1507   : > { %v2233_v0 = vmul.f32 0.03125, %v2232_v63 }
0x1509   : > { %v2234_v1 = vsub.f32 %v2225_v61, %v2233_v0 }
0x150b   : > { %v2235_v2 = vmul.f32 %v2234_v1, %v2234_v1 }
0x150d   : > { %v2236_v3 = vsel %vm573_vm0, %v2235_v2, 0.0 }
0x150e   : > { %2237 = vadd.xlane.f32.xlu1 %v2236_v3 }
0x159b   : > { %v2238_v4 = vpop.xlane.xlu1 %2237 }
0x159c   : > { %v2239_v5 = vmul.f32 0.03125, %v2238_v4 }
0x159e   : > { %v2240_v6 = vadd.f32 1e-12, %v2239_v5 }
0x15a0   : > { %2857 = vrsqrt.f32 %v2240_v6 }
0x15aa   : > { %v2858_v7 = vpop.eup %2857 }
0x15ab   : > { %v2242_v10 = vmul.f32 %v2858_v7, %v2234_v1 }
0x15ad   : > { %v2249_v12 = vmul.f32 %v2479_v9, %v2242_v10 }
0x15af   : > { %v2256_v13 = vadd.f32 %v2480_v11, %v2249_v12 }
0x15b1   : > { %2257 = vst.msk [vmem:[#allocation2] sm:$0xff] %vm573_vm0, %v2256_v13 }
0x15b8   : > { %v2264_v14 = vld [vmem:[%s2263_s17] sm:$0x1]  ;;  %s2935_s17 = sshll.u32 %s3024_s22, 4  ;;  %s2936_s17 = int_to_ptr.vmem [resolvable:$false] %s2935_s17 }
0x15b9   : > { %v2265_v39 = vmul.f32 %v2264_v14, %v2264_v14  ;;  %s2937_s18 = scalar_lea.vmem %s2936_s17, 32  ;;  %p2938_p13 = scmp.lt.s32.totalorder %s3637_s30, %s2936_s17 }
0x15ba   : > { %p2939_p4 = scmp.lt.s32.totalorder %s2937_s18, %s2931_s1 }
0x15bb   : > { %v2267_v15 = vsel %vm2266_vm7, %v2265_v39, 0.0 }
0x15bc   : > { %2268 = vadd.xlane.f32.xlu0 %v2267_v15  ;;  %p2940_p5 = por %p2939_p4, %p2938_p13 }
0x15be   : > { %p2941_p10 = pnand %p2940_p5, %p2934_p8 }
0x1649   : > { %v2269_v16 = vpop.xlane.xlu0 %2268 }
0x164a   : > { %2859 = vrsqrt.f32 %v2269_v16  ;;  %vm2272_vm8 = vcmp.eq.f32.partialorder %v2269_v16, inf  ;;  %v2275_v21 = vand.u32 2147483648, %v2269_v16  ;;  %vm2274_vm9 = vcmp.eq.f32.partialorder %v2269_v16, 0.0 }
0x1654   : > { %v2860_v17 = vpop.eup %2859 }
0x1655   : > { %v2271_v20 = vmul.f32 %v2860_v17, %v2269_v16 }
0x1657   : > { %v2273_v22 = vsel %vm2272_vm8, %v2269_v16, %v2271_v20 }
0x1658   : > { %v2276_v23 = vsel %vm2274_vm9, %v2275_v21, %v2273_v22 }
0x1659   : > { %v2277_v24 = vmax.f32 %v2276_v23, 1e-12 }
0x165b   : > { %2861 = vrcp.f32 %v2277_v24 }
0x1665   : > { %v2862_v26 = vpop.eup %2861 }
0x1666   : > { %v2279_v28 = vmul.f32 %v2862_v26, %v2264_v14 }
0x1668   : > { %v2280_v19 = vsel %vm573_vm0, %v2279_v28, 0.0 }
0x1669   : > { %2281 = vst [vmem:[%s564_s23] sm:$0x1] %v2280_v19 }
0x166a   : > { %2944 = shalt.err (!%p2941_p10)
}
0x166b   : > { %s2945_s4 = scalar_lea.hbm %s3635_s27, 16  ;;  %s2949_s24 = scalar_lea.hbm %s3760_s0, 32 }
0x166c   : > { %p2946_p6 = scmp.ne.s32.totalorder %s3635_s27, %s2945_s4  ;;  %p2950_p9 = scmp.lt.u32.totalorder %s3635_s27, %s3760_s0 }
0x166d   : > { %p2951_p12 = scmp.lt.u32.totalorder %s2949_s24, %s2945_s4  ;;  %p2953_p2 = scmp.lt.u32.totalorder %s2945_s4, %s3635_s27 }
0x166e   : > { %p2947_p7 = pnand %p2946_p6, %p3219_p11 }
0x166f   : > { %p2952_p1 = por %p2951_p12, %p2950_p9 }
0x1670   : > { %p2948_p0 = pneg %p2947_p7 }
0x1671   : > { %p2954_p3 = por %p2953_p2, %p2952_p1 }
0x1673   : > { %p2955_p8 = pnand %p2954_p3, %p2948_p0 }
0x1675   : > { %2958 = shalt.err (!%p2955_p8)
}
0x1676   : > { %2725 = dma.vmem_to_hbm [thread:$0]  (%p3219_p11), %s3637_s30, 16, %s3635_s27, %s2283_s19  }
0x1677 PF: > { %s3761_s1 = sld [smem:[#allocation15_spill]]  ;;  %s3762_s18 = sld [smem:[#allocation16_spill]] }
0x1678   : > { %p3764_p4 = scmp.ge.s32.totalorder %s3003_s21, 2 }
0x167d   : > { %s2307_s29 = sand.u32 1, %s3761_s1   ;;  %p3763_p13 = scmp.ne.s32.totalorder %s3762_s18, 0 }
0x167e   : > { %s2308_s23 = scalar_lea.sflag [#allocation7], %s2307_s29 }
0x167f   : > { %p2736_p5 = pnand %p3764_p4, %p3763_p13 }
0x1681   : > { %2986 = dma.done.wait (!%p2736_p5), %s2308_s23, 16  }
0x1682   : > { %2988 = vsyncadd (!%p2736_p5), %s2308_s23, 4294967280  ;;  %s3765_s21 = sld [smem:[#allocation17_spill]]  ;;  %s3766_s1 = smov %s2995_s20 }
0x1683   : > { %s3767_s20 = smov %s2999_s10  ;;  %s3768_s10 = smov %s3211_s16 }
0x1688   : > { %p35_p10 = scmp.ge.s32.totalorder %s3765_s21, 4  }
0x168a   :  { %37 = sbr.rel (!%p35_p10) target bundleno = 25 (0x19), region = 149 }
0x1691   :  { %2312 = vsyncpa [#allocation6], 1 }
0x1692   :  { %2314 = vsyncpa [#allocation6 + $0x1], 1 }
0x1693   :  { %2315 = vsyncpa [#allocation9], 1 }
0x1694   :  { %2316 = vsyncpa [#allocation7], 1 }
0x1695   :  { %2318 = vsyncpa [#allocation7 + $0x1], 1 }

</bundles_post_ra>
